<compile_context>
chip_gen: v6e
topology: v6e:2x2x1
jax: 0.10.0
libtpu: 0.0.40
codegen_flags: <defaults>
</compile_context>

<pallas_src>
import jax
import jax.numpy as jnp
from jax.experimental import pallas as pl
from jax.experimental.pallas import tpu as pltpu


# ------------------------------ fused kernel --------------------------------
def _gate_update(gates, c_prev, H):
    # gates: (B, 4H), PyTorch order [i, f, g, o].
    # Full-width sigmoid / tanh (2 EUP pushes), then slice.
    sg = jax.nn.sigmoid(gates)
    th = jnp.tanh(gates)
    i = sg[:, 0 * H:1 * H]
    f = sg[:, 1 * H:2 * H]
    g = th[:, 2 * H:3 * H]
    o = sg[:, 3 * H:4 * H]
    c_new = f * c_prev + i * g
    h_new = o * jnp.tanh(c_new)
    return h_new, c_new


def make_fused_kernel(B, T, Ds, Da, H, O, num_layer):
    def kernel(*refs):
        (state_ref, action_ref, w0s_ref, w0a_ref, whh0_ref, b0_ref) = refs[:6]
        stacked_refs = []
        idx = 6
        for _ in range(num_layer - 1):
            stacked_refs.append((refs[idx], refs[idx + 1]))
            idx += 2
        fcw_ref, fcb_ref, out_ref = refs[idx], refs[idx + 1], refs[idx + 2]

        # ---- preprocessing (fused; mirrors the in-place PyTorch scaling) ----
        st = state_ref[...]                                  # (B, Ds)
        s1 = st[:, 1:2] * (1.0 / 3.0)
        s0 = s1 * (1.0 / 30.0)                               # = orig[:,1] / 90
        parts = [s0, s1]
        if Ds > 2:
            parts.append(st[:, 2:])
        st_scaled = jnp.concatenate(parts, axis=1)           # (B, Ds)
        act = action_ref[...] * (1.0 / 5.0)                  # (B, T, Da)

        # ---- layer-0 input projection hoisted out of the recurrence ----
        gx_state = jnp.dot(st_scaled, w0s_ref[...],
                           preferred_element_type=jnp.float32)          # (B, 4H)
        gx_act = jnp.dot(act.reshape(B * T, Da), w0a_ref[...],
                         preferred_element_type=jnp.float32)            # (B*T, 4H)
        gx0 = (gx_act.reshape(B, T, 4 * H)
               + gx_state[:, None, :] + b0_ref[...][None])              # (B, T, 4H)

        whh0 = whh0_ref[...]
        stacked_w = [(w[...], b[...]) for (w, b) in stacked_refs]

        h = [jnp.zeros((B, H), jnp.float32) for _ in range(num_layer)]
        c = [jnp.zeros((B, H), jnp.float32) for _ in range(num_layer)]
        top_h = []

        # Fully unrolled time loop (T static, small); layers interleaved so the
        # scheduler can overlap layer-l step t with layer-0 step t+1.
        for t in range(T):
            g0 = gx0[:, t, :] + jnp.dot(h[0], whh0,
                                        preferred_element_type=jnp.float32)
            h[0], c[0] = _gate_update(g0, c[0], H)
            x_in = h[0]
            for l in range(1, num_layer):
                w_cat, b_l = stacked_w[l - 1]
                g = jnp.dot(jnp.concatenate([x_in, h[l]], axis=-1), w_cat,
                            preferred_element_type=jnp.float32) + b_l
                h[l], c[l] = _gate_update(g, c[l], H)
                x_in = h[l]
            top_h.append(x_in)

        h_all = jnp.stack(top_h, axis=1)                     # (B, T, H)

        # ---- FC fused into the kernel ----
        fcw = fcw_ref[...]                                   # (O, H)
        fcb = fcb_ref[...]                                   # (1, O)
        if O == 1:
            # VPU multiply + lane reduction; no MXU / separate launch needed.
            out = jnp.sum(h_all * fcw[None, :, :], axis=-1, keepdims=True) + fcb[None]
        else:
            out2d = jnp.dot(h_all.reshape(B * T, H), fcw.T,
                            preferred_element_type=jnp.float32) + fcb
            out = out2d.reshape(B, T, O)
        out_ref[...] = out

    return kernel


# ----------------------------- forward wrapper --------------------------------
def lstm_model_forward(flat_params, state, action):
    B, Ds = state.shape
    _, T, Da = action.shape
    H = flat_params[2].shape[0]                  # w_hh of layer 0: (H, 4H)
    num_layer = (len(flat_params) - 4) // 2
    O = flat_params[-2].shape[0]                 # fc weight stored as (O, H)

    kernel = make_fused_kernel(B, T, Ds, Da, H, O, num_layer)
    n_in = 2 + len(flat_params)
    return pl.pallas_call(
        kernel,
        out_shape=jax.ShapeDtypeStruct((B, T, O), jnp.float32),
        in_specs=[pl.BlockSpec(memory_space=pltpu.MemorySpace.VMEM)] * n_in,
        out_specs=pl.BlockSpec(memory_space=pltpu.MemorySpace.VMEM),
    )(state, action, *flat_params)


# ----------------------------- parameters (synthetic) --------------------------
def init_params(key, input_size_state, input_size_action, hidden_size,
                output_size, num_layer):
    d_in = input_size_state + input_size_action
    stdv = 1.0 / (hidden_size ** 0.5)            # PyTorch default init range
    lstm_params = []
    for layer in range(num_layer):
        in_dim = d_in if layer == 0 else hidden_size
        key, k1, k2, k3, k4 = jax.random.split(key, 5)
        w_ih = jax.random.uniform(k1, (in_dim, 4 * hidden_size), jnp.float32, -stdv, stdv)
        w_hh = jax.random.uniform(k2, (hidden_size, 4 * hidden_size), jnp.float32, -stdv, stdv)
        b_ih = jax.random.uniform(k3, (4 * hidden_size,), jnp.float32, -stdv, stdv)
        b_hh = jax.random.uniform(k4, (4 * hidden_size,), jnp.float32, -stdv, stdv)
        lstm_params.append((w_ih, w_hh, (b_ih + b_hh).reshape(1, 4 * hidden_size)))
    key, kw, kb = jax.random.split(key, 3)
    fc_w = jax.random.uniform(kw, (hidden_size, output_size), jnp.float32, -stdv, stdv)
    fc_b = jax.random.uniform(kb, (1, output_size), jnp.float32, -stdv, stdv)
    return {"lstm": lstm_params, "fc_w": fc_w, "fc_b": fc_b}


def prepare_kernel_params(params, input_size_state):
    """One-time repack into the fused-kernel layout (no per-call XLA glue)."""
    lstm = params["lstm"]
    w_ih0, w_hh0, b0 = lstm[0]
    flat = [w_ih0[:input_size_state],            # state part of layer-0 W_ih
            w_ih0[input_size_state:],            # action part of layer-0 W_ih
            w_hh0, b0]
    for (w_ih, w_hh, b) in lstm[1:]:
        flat.append(jnp.concatenate([w_ih, w_hh], axis=0))   # (2H, 4H)
        flat.append(b)
    flat.append(params["fc_w"].T)                # (O, H)
    flat.append(params["fc_b"])                  # (1, O)
    return [jnp.asarray(p) for p in flat]


# ------------------------------- pure-JAX reference ----------------------------
def reference_forward(params, state, action):
    s1 = state[:, 1] / 3.0
    s0 = s1 / 30.0
    state = state.at[:, 1].set(s1).at[:, 0].set(s0)
    action = action / 5.0
    B, T, _ = action.shape
    x = jnp.concatenate(
        [jnp.broadcast_to(state[:, None, :], (B, T, state.shape[-1])), action], axis=-1)
    for (w_ih, w_hh, b) in params["lstm"]:
        H = w_hh.shape[0]
        h = jnp.zeros((B, H), jnp.float32)
        c = jnp.zeros((B, H), jnp.float32)
        outs = []
        for t in range(T):
            gates = x[:, t, :] @ w_ih + h @ w_hh + b
            i = jax.nn.sigmoid(gates[:, 0 * H:1 * H])
            f = jax.nn.sigmoid(gates[:, 1 * H:2 * H])
            g = jnp.tanh(gates[:, 2 * H:3 * H])
            o = jax.nn.sigmoid(gates[:, 3 * H:4 * H])
            c = f * c + i * g
            h = o * jnp.tanh(c)
            outs.append(h)
        x = jnp.stack(outs, axis=1)
    return x @ params["fc_w"] + params["fc_b"]


if __name__ == "__main__":
    input_size_state = 4
    input_size_action = 4
    hidden_size = 32
    output_size = 1
    num_layer = 2
    B, T = 2, 8

    key = jax.random.PRNGKey(0)
    kp, ks, ka = jax.random.split(key, 3)
    params = init_params(kp, input_size_state, input_size_action,
                         hidden_size, output_size, num_layer)
    flat_params = prepare_kernel_params(params, input_size_state)
    state = jax.random.normal(ks, (B, input_size_state), jnp.float32)
    action = jax.random.normal(ka, (B, T, input_size_action), jnp.float32)

    out = jax.jit(lstm_model_forward)(flat_params, state, action)
    out = jax.block_until_ready(out)
    assert out.shape == (B, T, output_size), out.shape
    assert bool(jnp.all(jnp.isfinite(out)))

    ref = jax.block_until_ready(jax.jit(reference_forward)(params, state, action))
    assert jnp.allclose(out, ref, atol=1e-3, rtol=1e-3), \
        float(jnp.max(jnp.abs(out - ref)))

    print("KERNEL_OK")
</pallas_src>

<mosaic_0001>
module attributes {stable_mosaic.version = 11 : i64} {
  func.func @kernel(%arg0: memref<2x4xf32, #tpu.memory_space<vmem>>, %arg1: memref<2x8x4xf32, #tpu.memory_space<vmem>>, %arg2: memref<4x128xf32, #tpu.memory_space<vmem>>, %arg3: memref<4x128xf32, #tpu.memory_space<vmem>>, %arg4: memref<32x128xf32, #tpu.memory_space<vmem>>, %arg5: memref<1x128xf32, #tpu.memory_space<vmem>>, %arg6: memref<64x128xf32, #tpu.memory_space<vmem>>, %arg7: memref<1x128xf32, #tpu.memory_space<vmem>>, %arg8: memref<1x32xf32, #tpu.memory_space<vmem>>, %arg9: memref<1x1xf32, #tpu.memory_space<vmem>>, %arg10: memref<2x8x1xf32, #tpu.memory_space<vmem>>) attributes {dimension_semantics = [], scalar_prefetch = 0 : i64, scratch_operands = 0 : i64, tpu.core_type = #tpu.core_type<tc>} {
    %c0 = arith.constant 0 : index
    %c0_0 = arith.constant 0 : index
    %0 = vector.load %arg0[%c0, %c0_0] : memref<2x4xf32, #tpu.memory_space<vmem>>, vector<2x4xf32>
    %1 = vector.extract_strided_slice %0 {offsets = [0, 1], sizes = [2, 1], strides = [1, 1]} : vector<2x4xf32> to vector<2x1xf32>
    %cst = arith.constant 0.333333343 : f32
    %2 = vector.broadcast %cst : f32 to vector<2x1xf32>
    %3 = arith.mulf %1, %2 : vector<2x1xf32>
    %cst_1 = arith.constant 0.0333333351 : f32
    %4 = vector.broadcast %cst_1 : f32 to vector<2x1xf32>
    %5 = arith.mulf %3, %4 : vector<2x1xf32>
    %6 = vector.extract_strided_slice %0 {offsets = [0, 2], sizes = [2, 2], strides = [1, 1]} : vector<2x4xf32> to vector<2x2xf32>
    %7 = tpu.concatenate %5, %3, %6 in 1 : vector<2x1xf32>, vector<2x1xf32>, vector<2x2xf32> -> vector<2x4xf32>
    %c0_2 = arith.constant 0 : index
    %c0_3 = arith.constant 0 : index
    %c0_4 = arith.constant 0 : index
    %8 = vector.load %arg1[%c0_2, %c0_3, %c0_4] : memref<2x8x4xf32, #tpu.memory_space<vmem>>, vector<2x8x4xf32>
    %cst_5 = arith.constant 2.000000e-01 : f32
    %9 = vector.broadcast %cst_5 : f32 to vector<2x8x4xf32>
    %10 = arith.mulf %8, %9 : vector<2x8x4xf32>
    %c0_6 = arith.constant 0 : index
    %c0_7 = arith.constant 0 : index
    %11 = vector.load %arg2[%c0_6, %c0_7] : memref<4x128xf32, #tpu.memory_space<vmem>>, vector<4x128xf32>
    %cst_8 = arith.constant dense<0.000000e+00> : vector<2x128xf32>
    %12 = tpu.matmul %7, %11, %cst_8 {dimension_numbers = #tpu.dot_dimension_numbers<[1], [0], [0], [1], [0, 0, 1, 1], [], []>} : vector<2x4xf32>, vector<4x128xf32>, vector<2x128xf32> -> vector<2x128xf32>
    %13 = vector.shape_cast %10 : vector<2x8x4xf32> to vector<16x4xf32>
    %c0_9 = arith.constant 0 : index
    %c0_10 = arith.constant 0 : index
    %14 = vector.load %arg3[%c0_9, %c0_10] : memref<4x128xf32, #tpu.memory_space<vmem>>, vector<4x128xf32>
    %cst_11 = arith.constant dense<0.000000e+00> : vector<16x128xf32>
    %15 = tpu.matmul %13, %14, %cst_11 {dimension_numbers = #tpu.dot_dimension_numbers<[1], [0], [0], [1], [0, 0, 1, 1], [], []>} : vector<16x4xf32>, vector<4x128xf32>, vector<16x128xf32> -> vector<16x128xf32>
    %16 = vector.shape_cast %15 : vector<16x128xf32> to vector<2x8x128xf32>
    %17 = vector.shape_cast %12 : vector<2x128xf32> to vector<2x1x128xf32>
    %18 = vector.broadcast %17 : vector<2x1x128xf32> to vector<2x8x128xf32>
    %19 = arith.addf %16, %18 : vector<2x8x128xf32>
    %c0_12 = arith.constant 0 : index
    %c0_13 = arith.constant 0 : index
    %20 = vector.load %arg5[%c0_12, %c0_13] : memref<1x128xf32, #tpu.memory_space<vmem>>, vector<1x128xf32>
    %21 = vector.shape_cast %20 : vector<1x128xf32> to vector<1x1x128xf32>
    %22 = vector.broadcast %21 : vector<1x1x128xf32> to vector<2x8x128xf32>
    %23 = arith.addf %19, %22 : vector<2x8x128xf32>
    %c0_14 = arith.constant 0 : index
    %c0_15 = arith.constant 0 : index
    %24 = vector.load %arg4[%c0_14, %c0_15] : memref<32x128xf32, #tpu.memory_space<vmem>>, vector<32x128xf32>
    %c0_16 = arith.constant 0 : index
    %c0_17 = arith.constant 0 : index
    %25 = vector.load %arg6[%c0_16, %c0_17] : memref<64x128xf32, #tpu.memory_space<vmem>>, vector<64x128xf32>
    %c0_18 = arith.constant 0 : index
    %c0_19 = arith.constant 0 : index
    %26 = vector.load %arg7[%c0_18, %c0_19] : memref<1x128xf32, #tpu.memory_space<vmem>>, vector<1x128xf32>
    %cst_20 = arith.constant 0.000000e+00 : f32
    %27 = vector.broadcast %cst_20 : f32 to vector<2x32xf32>
    %cst_21 = arith.constant 0.000000e+00 : f32
    %28 = vector.broadcast %cst_21 : f32 to vector<2x32xf32>
    %cst_22 = arith.constant 0.000000e+00 : f32
    %29 = vector.broadcast %cst_22 : f32 to vector<2x32xf32>
    %cst_23 = arith.constant 0.000000e+00 : f32
    %30 = vector.broadcast %cst_23 : f32 to vector<2x32xf32>
    %31 = vector.extract_strided_slice %23 {offsets = [0, 0, 0], sizes = [2, 1, 128], strides = [1, 1, 1]} : vector<2x8x128xf32> to vector<2x1x128xf32>
    %32 = vector.shape_cast %31 : vector<2x1x128xf32> to vector<2x128xf32>
    %cst_24 = arith.constant dense<0.000000e+00> : vector<2x128xf32>
    %33 = tpu.matmul %27, %24, %cst_24 {dimension_numbers = #tpu.dot_dimension_numbers<[1], [0], [0], [1], [0, 0, 1, 1], [], []>} : vector<2x32xf32>, vector<32x128xf32>, vector<2x128xf32> -> vector<2x128xf32>
    %34 = arith.addf %32, %33 : vector<2x128xf32>
    %35 = arith.negf %34 : vector<2x128xf32>
    %36 = math.exp %35 : vector<2x128xf32>
    %cst_25 = arith.constant 1.000000e+00 : f32
    %37 = vector.broadcast %cst_25 : f32 to vector<2x128xf32>
    %38 = arith.addf %37, %36 : vector<2x128xf32>
    %39 = arith.divf %37, %38 : vector<2x128xf32>
    %40 = math.tanh %34 : vector<2x128xf32>
    %41 = vector.extract_strided_slice %39 {offsets = [0, 0], sizes = [2, 32], strides = [1, 1]} : vector<2x128xf32> to vector<2x32xf32>
    %42 = vector.extract_strided_slice %39 {offsets = [0, 32], sizes = [2, 32], strides = [1, 1]} : vector<2x128xf32> to vector<2x32xf32>
    %43 = vector.extract_strided_slice %40 {offsets = [0, 64], sizes = [2, 32], strides = [1, 1]} : vector<2x128xf32> to vector<2x32xf32>
    %44 = vector.extract_strided_slice %39 {offsets = [0, 96], sizes = [2, 32], strides = [1, 1]} : vector<2x128xf32> to vector<2x32xf32>
    %45 = arith.mulf %42, %29 : vector<2x32xf32>
    %46 = arith.mulf %41, %43 : vector<2x32xf32>
    %47 = arith.addf %45, %46 : vector<2x32xf32>
    %48 = math.tanh %47 : vector<2x32xf32>
    %49 = arith.mulf %44, %48 : vector<2x32xf32>
    %50 = tpu.concatenate %49, %28 in 1 : vector<2x32xf32>, vector<2x32xf32> -> vector<2x64xf32>
    %cst_26 = arith.constant dense<0.000000e+00> : vector<2x128xf32>
    %51 = tpu.matmul %50, %25, %cst_26 {dimension_numbers = #tpu.dot_dimension_numbers<[1], [0], [0], [1], [0, 0, 1, 1], [], []>} : vector<2x64xf32>, vector<64x128xf32>, vector<2x128xf32> -> vector<2x128xf32>
    %52 = vector.broadcast %26 : vector<1x128xf32> to vector<2x128xf32>
    %53 = arith.addf %51, %52 : vector<2x128xf32>
    %54 = arith.negf %53 : vector<2x128xf32>
    %55 = math.exp %54 : vector<2x128xf32>
    %cst_27 = arith.constant 1.000000e+00 : f32
    %56 = vector.broadcast %cst_27 : f32 to vector<2x128xf32>
    %57 = arith.addf %56, %55 : vector<2x128xf32>
    %58 = arith.divf %56, %57 : vector<2x128xf32>
    %59 = math.tanh %53 : vector<2x128xf32>
    %60 = vector.extract_strided_slice %58 {offsets = [0, 0], sizes = [2, 32], strides = [1, 1]} : vector<2x128xf32> to vector<2x32xf32>
    %61 = vector.extract_strided_slice %58 {offsets = [0, 32], sizes = [2, 32], strides = [1, 1]} : vector<2x128xf32> to vector<2x32xf32>
    %62 = vector.extract_strided_slice %59 {offsets = [0, 64], sizes = [2, 32], strides = [1, 1]} : vector<2x128xf32> to vector<2x32xf32>
    %63 = vector.extract_strided_slice %58 {offsets = [0, 96], sizes = [2, 32], strides = [1, 1]} : vector<2x128xf32> to vector<2x32xf32>
    %64 = arith.mulf %61, %30 : vector<2x32xf32>
    %65 = arith.mulf %60, %62 : vector<2x32xf32>
    %66 = arith.addf %64, %65 : vector<2x32xf32>
    %67 = math.tanh %66 : vector<2x32xf32>
    %68 = arith.mulf %63, %67 : vector<2x32xf32>
    %69 = vector.extract_strided_slice %23 {offsets = [0, 1, 0], sizes = [2, 1, 128], strides = [1, 1, 1]} : vector<2x8x128xf32> to vector<2x1x128xf32>
    %70 = vector.shape_cast %69 : vector<2x1x128xf32> to vector<2x128xf32>
    %cst_28 = arith.constant dense<0.000000e+00> : vector<2x128xf32>
    %71 = tpu.matmul %49, %24, %cst_28 {dimension_numbers = #tpu.dot_dimension_numbers<[1], [0], [0], [1], [0, 0, 1, 1], [], []>} : vector<2x32xf32>, vector<32x128xf32>, vector<2x128xf32> -> vector<2x128xf32>
    %72 = arith.addf %70, %71 : vector<2x128xf32>
    %73 = arith.negf %72 : vector<2x128xf32>
    %74 = math.exp %73 : vector<2x128xf32>
    %cst_29 = arith.constant 1.000000e+00 : f32
    %75 = vector.broadcast %cst_29 : f32 to vector<2x128xf32>
    %76 = arith.addf %75, %74 : vector<2x128xf32>
    %77 = arith.divf %75, %76 : vector<2x128xf32>
    %78 = math.tanh %72 : vector<2x128xf32>
    %79 = vector.extract_strided_slice %77 {offsets = [0, 0], sizes = [2, 32], strides = [1, 1]} : vector<2x128xf32> to vector<2x32xf32>
    %80 = vector.extract_strided_slice %77 {offsets = [0, 32], sizes = [2, 32], strides = [1, 1]} : vector<2x128xf32> to vector<2x32xf32>
    %81 = vector.extract_strided_slice %78 {offsets = [0, 64], sizes = [2, 32], strides = [1, 1]} : vector<2x128xf32> to vector<2x32xf32>
    %82 = vector.extract_strided_slice %77 {offsets = [0, 96], sizes = [2, 32], strides = [1, 1]} : vector<2x128xf32> to vector<2x32xf32>
    %83 = arith.mulf %80, %47 : vector<2x32xf32>
    %84 = arith.mulf %79, %81 : vector<2x32xf32>
    %85 = arith.addf %83, %84 : vector<2x32xf32>
    %86 = math.tanh %85 : vector<2x32xf32>
    %87 = arith.mulf %82, %86 : vector<2x32xf32>
    %88 = tpu.concatenate %87, %68 in 1 : vector<2x32xf32>, vector<2x32xf32> -> vector<2x64xf32>
    %cst_30 = arith.constant dense<0.000000e+00> : vector<2x128xf32>
    %89 = tpu.matmul %88, %25, %cst_30 {dimension_numbers = #tpu.dot_dimension_numbers<[1], [0], [0], [1], [0, 0, 1, 1], [], []>} : vector<2x64xf32>, vector<64x128xf32>, vector<2x128xf32> -> vector<2x128xf32>
    %90 = vector.broadcast %26 : vector<1x128xf32> to vector<2x128xf32>
    %91 = arith.addf %89, %90 : vector<2x128xf32>
    %92 = arith.negf %91 : vector<2x128xf32>
    %93 = math.exp %92 : vector<2x128xf32>
    %cst_31 = arith.constant 1.000000e+00 : f32
    %94 = vector.broadcast %cst_31 : f32 to vector<2x128xf32>
    %95 = arith.addf %94, %93 : vector<2x128xf32>
    %96 = arith.divf %94, %95 : vector<2x128xf32>
    %97 = math.tanh %91 : vector<2x128xf32>
    %98 = vector.extract_strided_slice %96 {offsets = [0, 0], sizes = [2, 32], strides = [1, 1]} : vector<2x128xf32> to vector<2x32xf32>
    %99 = vector.extract_strided_slice %96 {offsets = [0, 32], sizes = [2, 32], strides = [1, 1]} : vector<2x128xf32> to vector<2x32xf32>
    %100 = vector.extract_strided_slice %97 {offsets = [0, 64], sizes = [2, 32], strides = [1, 1]} : vector<2x128xf32> to vector<2x32xf32>
    %101 = vector.extract_strided_slice %96 {offsets = [0, 96], sizes = [2, 32], strides = [1, 1]} : vector<2x128xf32> to vector<2x32xf32>
    %102 = arith.mulf %99, %66 : vector<2x32xf32>
    %103 = arith.mulf %98, %100 : vector<2x32xf32>
    %104 = arith.addf %102, %103 : vector<2x32xf32>
    %105 = math.tanh %104 : vector<2x32xf32>
    %106 = arith.mulf %101, %105 : vector<2x32xf32>
    %107 = vector.extract_strided_slice %23 {offsets = [0, 2, 0], sizes = [2, 1, 128], strides = [1, 1, 1]} : vector<2x8x128xf32> to vector<2x1x128xf32>
    %108 = vector.shape_cast %107 : vector<2x1x128xf32> to vector<2x128xf32>
    %cst_32 = arith.constant dense<0.000000e+00> : vector<2x128xf32>
    %109 = tpu.matmul %87, %24, %cst_32 {dimension_numbers = #tpu.dot_dimension_numbers<[1], [0], [0], [1], [0, 0, 1, 1], [], []>} : vector<2x32xf32>, vector<32x128xf32>, vector<2x128xf32> -> vector<2x128xf32>
    %110 = arith.addf %108, %109 : vector<2x128xf32>
    %111 = arith.negf %110 : vector<2x128xf32>
    %112 = math.exp %111 : vector<2x128xf32>
    %cst_33 = arith.constant 1.000000e+00 : f32
    %113 = vector.broadcast %cst_33 : f32 to vector<2x128xf32>
    %114 = arith.addf %113, %112 : vector<2x128xf32>
    %115 = arith.divf %113, %114 : vector<2x128xf32>
    %116 = math.tanh %110 : vector<2x128xf32>
    %117 = vector.extract_strided_slice %115 {offsets = [0, 0], sizes = [2, 32], strides = [1, 1]} : vector<2x128xf32> to vector<2x32xf32>
    %118 = vector.extract_strided_slice %115 {offsets = [0, 32], sizes = [2, 32], strides = [1, 1]} : vector<2x128xf32> to vector<2x32xf32>
    %119 = vector.extract_strided_slice %116 {offsets = [0, 64], sizes = [2, 32], strides = [1, 1]} : vector<2x128xf32> to vector<2x32xf32>
    %120 = vector.extract_strided_slice %115 {offsets = [0, 96], sizes = [2, 32], strides = [1, 1]} : vector<2x128xf32> to vector<2x32xf32>
    %121 = arith.mulf %118, %85 : vector<2x32xf32>
    %122 = arith.mulf %117, %119 : vector<2x32xf32>
    %123 = arith.addf %121, %122 : vector<2x32xf32>
    %124 = math.tanh %123 : vector<2x32xf32>
    %125 = arith.mulf %120, %124 : vector<2x32xf32>
    %126 = tpu.concatenate %125, %106 in 1 : vector<2x32xf32>, vector<2x32xf32> -> vector<2x64xf32>
    %cst_34 = arith.constant dense<0.000000e+00> : vector<2x128xf32>
    %127 = tpu.matmul %126, %25, %cst_34 {dimension_numbers = #tpu.dot_dimension_numbers<[1], [0], [0], [1], [0, 0, 1, 1], [], []>} : vector<2x64xf32>, vector<64x128xf32>, vector<2x128xf32> -> vector<2x128xf32>
    %128 = vector.broadcast %26 : vector<1x128xf32> to vector<2x128xf32>
    %129 = arith.addf %127, %128 : vector<2x128xf32>
    %130 = arith.negf %129 : vector<2x128xf32>
    %131 = math.exp %130 : vector<2x128xf32>
    %cst_35 = arith.constant 1.000000e+00 : f32
    %132 = vector.broadcast %cst_35 : f32 to vector<2x128xf32>
    %133 = arith.addf %132, %131 : vector<2x128xf32>
    %134 = arith.divf %132, %133 : vector<2x128xf32>
    %135 = math.tanh %129 : vector<2x128xf32>
    %136 = vector.extract_strided_slice %134 {offsets = [0, 0], sizes = [2, 32], strides = [1, 1]} : vector<2x128xf32> to vector<2x32xf32>
    %137 = vector.extract_strided_slice %134 {offsets = [0, 32], sizes = [2, 32], strides = [1, 1]} : vector<2x128xf32> to vector<2x32xf32>
    %138 = vector.extract_strided_slice %135 {offsets = [0, 64], sizes = [2, 32], strides = [1, 1]} : vector<2x128xf32> to vector<2x32xf32>
    %139 = vector.extract_strided_slice %134 {offsets = [0, 96], sizes = [2, 32], strides = [1, 1]} : vector<2x128xf32> to vector<2x32xf32>
    %140 = arith.mulf %137, %104 : vector<2x32xf32>
    %141 = arith.mulf %136, %138 : vector<2x32xf32>
    %142 = arith.addf %140, %141 : vector<2x32xf32>
    %143 = math.tanh %142 : vector<2x32xf32>
    %144 = arith.mulf %139, %143 : vector<2x32xf32>
    %145 = vector.extract_strided_slice %23 {offsets = [0, 3, 0], sizes = [2, 1, 128], strides = [1, 1, 1]} : vector<2x8x128xf32> to vector<2x1x128xf32>
    %146 = vector.shape_cast %145 : vector<2x1x128xf32> to vector<2x128xf32>
    %cst_36 = arith.constant dense<0.000000e+00> : vector<2x128xf32>
    %147 = tpu.matmul %125, %24, %cst_36 {dimension_numbers = #tpu.dot_dimension_numbers<[1], [0], [0], [1], [0, 0, 1, 1], [], []>} : vector<2x32xf32>, vector<32x128xf32>, vector<2x128xf32> -> vector<2x128xf32>
    %148 = arith.addf %146, %147 : vector<2x128xf32>
    %149 = arith.negf %148 : vector<2x128xf32>
    %150 = math.exp %149 : vector<2x128xf32>
    %cst_37 = arith.constant 1.000000e+00 : f32
    %151 = vector.broadcast %cst_37 : f32 to vector<2x128xf32>
    %152 = arith.addf %151, %150 : vector<2x128xf32>
    %153 = arith.divf %151, %152 : vector<2x128xf32>
    %154 = math.tanh %148 : vector<2x128xf32>
    %155 = vector.extract_strided_slice %153 {offsets = [0, 0], sizes = [2, 32], strides = [1, 1]} : vector<2x128xf32> to vector<2x32xf32>
    %156 = vector.extract_strided_slice %153 {offsets = [0, 32], sizes = [2, 32], strides = [1, 1]} : vector<2x128xf32> to vector<2x32xf32>
    %157 = vector.extract_strided_slice %154 {offsets = [0, 64], sizes = [2, 32], strides = [1, 1]} : vector<2x128xf32> to vector<2x32xf32>
    %158 = vector.extract_strided_slice %153 {offsets = [0, 96], sizes = [2, 32], strides = [1, 1]} : vector<2x128xf32> to vector<2x32xf32>
    %159 = arith.mulf %156, %123 : vector<2x32xf32>
    %160 = arith.mulf %155, %157 : vector<2x32xf32>
    %161 = arith.addf %159, %160 : vector<2x32xf32>
    %162 = math.tanh %161 : vector<2x32xf32>
    %163 = arith.mulf %158, %162 : vector<2x32xf32>
    %164 = tpu.concatenate %163, %144 in 1 : vector<2x32xf32>, vector<2x32xf32> -> vector<2x64xf32>
    %cst_38 = arith.constant dense<0.000000e+00> : vector<2x128xf32>
    %165 = tpu.matmul %164, %25, %cst_38 {dimension_numbers = #tpu.dot_dimension_numbers<[1], [0], [0], [1], [0, 0, 1, 1], [], []>} : vector<2x64xf32>, vector<64x128xf32>, vector<2x128xf32> -> vector<2x128xf32>
    %166 = vector.broadcast %26 : vector<1x128xf32> to vector<2x128xf32>
    %167 = arith.addf %165, %166 : vector<2x128xf32>
    %168 = arith.negf %167 : vector<2x128xf32>
    %169 = math.exp %168 : vector<2x128xf32>
    %cst_39 = arith.constant 1.000000e+00 : f32
    %170 = vector.broadcast %cst_39 : f32 to vector<2x128xf32>
    %171 = arith.addf %170, %169 : vector<2x128xf32>
    %172 = arith.divf %170, %171 : vector<2x128xf32>
    %173 = math.tanh %167 : vector<2x128xf32>
    %174 = vector.extract_strided_slice %172 {offsets = [0, 0], sizes = [2, 32], strides = [1, 1]} : vector<2x128xf32> to vector<2x32xf32>
    %175 = vector.extract_strided_slice %172 {offsets = [0, 32], sizes = [2, 32], strides = [1, 1]} : vector<2x128xf32> to vector<2x32xf32>
    %176 = vector.extract_strided_slice %173 {offsets = [0, 64], sizes = [2, 32], strides = [1, 1]} : vector<2x128xf32> to vector<2x32xf32>
    %177 = vector.extract_strided_slice %172 {offsets = [0, 96], sizes = [2, 32], strides = [1, 1]} : vector<2x128xf32> to vector<2x32xf32>
    %178 = arith.mulf %175, %142 : vector<2x32xf32>
    %179 = arith.mulf %174, %176 : vector<2x32xf32>
    %180 = arith.addf %178, %179 : vector<2x32xf32>
    %181 = math.tanh %180 : vector<2x32xf32>
    %182 = arith.mulf %177, %181 : vector<2x32xf32>
    %183 = vector.extract_strided_slice %23 {offsets = [0, 4, 0], sizes = [2, 1, 128], strides = [1, 1, 1]} : vector<2x8x128xf32> to vector<2x1x128xf32>
    %184 = vector.shape_cast %183 : vector<2x1x128xf32> to vector<2x128xf32>
    %cst_40 = arith.constant dense<0.000000e+00> : vector<2x128xf32>
    %185 = tpu.matmul %163, %24, %cst_40 {dimension_numbers = #tpu.dot_dimension_numbers<[1], [0], [0], [1], [0, 0, 1, 1], [], []>} : vector<2x32xf32>, vector<32x128xf32>, vector<2x128xf32> -> vector<2x128xf32>
    %186 = arith.addf %184, %185 : vector<2x128xf32>
    %187 = arith.negf %186 : vector<2x128xf32>
    %188 = math.exp %187 : vector<2x128xf32>
    %cst_41 = arith.constant 1.000000e+00 : f32
    %189 = vector.broadcast %cst_41 : f32 to vector<2x128xf32>
    %190 = arith.addf %189, %188 : vector<2x128xf32>
    %191 = arith.divf %189, %190 : vector<2x128xf32>
    %192 = math.tanh %186 : vector<2x128xf32>
    %193 = vector.extract_strided_slice %191 {offsets = [0, 0], sizes = [2, 32], strides = [1, 1]} : vector<2x128xf32> to vector<2x32xf32>
    %194 = vector.extract_strided_slice %191 {offsets = [0, 32], sizes = [2, 32], strides = [1, 1]} : vector<2x128xf32> to vector<2x32xf32>
    %195 = vector.extract_strided_slice %192 {offsets = [0, 64], sizes = [2, 32], strides = [1, 1]} : vector<2x128xf32> to vector<2x32xf32>
    %196 = vector.extract_strided_slice %191 {offsets = [0, 96], sizes = [2, 32], strides = [1, 1]} : vector<2x128xf32> to vector<2x32xf32>
    %197 = arith.mulf %194, %161 : vector<2x32xf32>
    %198 = arith.mulf %193, %195 : vector<2x32xf32>
    %199 = arith.addf %197, %198 : vector<2x32xf32>
    %200 = math.tanh %199 : vector<2x32xf32>
    %201 = arith.mulf %196, %200 : vector<2x32xf32>
    %202 = tpu.concatenate %201, %182 in 1 : vector<2x32xf32>, vector<2x32xf32> -> vector<2x64xf32>
    %cst_42 = arith.constant dense<0.000000e+00> : vector<2x128xf32>
    %203 = tpu.matmul %202, %25, %cst_42 {dimension_numbers = #tpu.dot_dimension_numbers<[1], [0], [0], [1], [0, 0, 1, 1], [], []>} : vector<2x64xf32>, vector<64x128xf32>, vector<2x128xf32> -> vector<2x128xf32>
    %204 = vector.broadcast %26 : vector<1x128xf32> to vector<2x128xf32>
    %205 = arith.addf %203, %204 : vector<2x128xf32>
    %206 = arith.negf %205 : vector<2x128xf32>
    %207 = math.exp %206 : vector<2x128xf32>
    %cst_43 = arith.constant 1.000000e+00 : f32
    %208 = vector.broadcast %cst_43 : f32 to vector<2x128xf32>
    %209 = arith.addf %208, %207 : vector<2x128xf32>
    %210 = arith.divf %208, %209 : vector<2x128xf32>
    %211 = math.tanh %205 : vector<2x128xf32>
    %212 = vector.extract_strided_slice %210 {offsets = [0, 0], sizes = [2, 32], strides = [1, 1]} : vector<2x128xf32> to vector<2x32xf32>
    %213 = vector.extract_strided_slice %210 {offsets = [0, 32], sizes = [2, 32], strides = [1, 1]} : vector<2x128xf32> to vector<2x32xf32>
    %214 = vector.extract_strided_slice %211 {offsets = [0, 64], sizes = [2, 32], strides = [1, 1]} : vector<2x128xf32> to vector<2x32xf32>
    %215 = vector.extract_strided_slice %210 {offsets = [0, 96], sizes = [2, 32], strides = [1, 1]} : vector<2x128xf32> to vector<2x32xf32>
    %216 = arith.mulf %213, %180 : vector<2x32xf32>
    %217 = arith.mulf %212, %214 : vector<2x32xf32>
    %218 = arith.addf %216, %217 : vector<2x32xf32>
    %219 = math.tanh %218 : vector<2x32xf32>
    %220 = arith.mulf %215, %219 : vector<2x32xf32>
    %221 = vector.extract_strided_slice %23 {offsets = [0, 5, 0], sizes = [2, 1, 128], strides = [1, 1, 1]} : vector<2x8x128xf32> to vector<2x1x128xf32>
    %222 = vector.shape_cast %221 : vector<2x1x128xf32> to vector<2x128xf32>
    %cst_44 = arith.constant dense<0.000000e+00> : vector<2x128xf32>
    %223 = tpu.matmul %201, %24, %cst_44 {dimension_numbers = #tpu.dot_dimension_numbers<[1], [0], [0], [1], [0, 0, 1, 1], [], []>} : vector<2x32xf32>, vector<32x128xf32>, vector<2x128xf32> -> vector<2x128xf32>
    %224 = arith.addf %222, %223 : vector<2x128xf32>
    %225 = arith.negf %224 : vector<2x128xf32>
    %226 = math.exp %225 : vector<2x128xf32>
    %cst_45 = arith.constant 1.000000e+00 : f32
    %227 = vector.broadcast %cst_45 : f32 to vector<2x128xf32>
    %228 = arith.addf %227, %226 : vector<2x128xf32>
    %229 = arith.divf %227, %228 : vector<2x128xf32>
    %230 = math.tanh %224 : vector<2x128xf32>
    %231 = vector.extract_strided_slice %229 {offsets = [0, 0], sizes = [2, 32], strides = [1, 1]} : vector<2x128xf32> to vector<2x32xf32>
    %232 = vector.extract_strided_slice %229 {offsets = [0, 32], sizes = [2, 32], strides = [1, 1]} : vector<2x128xf32> to vector<2x32xf32>
    %233 = vector.extract_strided_slice %230 {offsets = [0, 64], sizes = [2, 32], strides = [1, 1]} : vector<2x128xf32> to vector<2x32xf32>
    %234 = vector.extract_strided_slice %229 {offsets = [0, 96], sizes = [2, 32], strides = [1, 1]} : vector<2x128xf32> to vector<2x32xf32>
    %235 = arith.mulf %232, %199 : vector<2x32xf32>
    %236 = arith.mulf %231, %233 : vector<2x32xf32>
    %237 = arith.addf %235, %236 : vector<2x32xf32>
    %238 = math.tanh %237 : vector<2x32xf32>
    %239 = arith.mulf %234, %238 : vector<2x32xf32>
    %240 = tpu.concatenate %239, %220 in 1 : vector<2x32xf32>, vector<2x32xf32> -> vector<2x64xf32>
    %cst_46 = arith.constant dense<0.000000e+00> : vector<2x128xf32>
    %241 = tpu.matmul %240, %25, %cst_46 {dimension_numbers = #tpu.dot_dimension_numbers<[1], [0], [0], [1], [0, 0, 1, 1], [], []>} : vector<2x64xf32>, vector<64x128xf32>, vector<2x128xf32> -> vector<2x128xf32>
    %242 = vector.broadcast %26 : vector<1x128xf32> to vector<2x128xf32>
    %243 = arith.addf %241, %242 : vector<2x128xf32>
    %244 = arith.negf %243 : vector<2x128xf32>
    %245 = math.exp %244 : vector<2x128xf32>
    %cst_47 = arith.constant 1.000000e+00 : f32
    %246 = vector.broadcast %cst_47 : f32 to vector<2x128xf32>
    %247 = arith.addf %246, %245 : vector<2x128xf32>
    %248 = arith.divf %246, %247 : vector<2x128xf32>
    %249 = math.tanh %243 : vector<2x128xf32>
    %250 = vector.extract_strided_slice %248 {offsets = [0, 0], sizes = [2, 32], strides = [1, 1]} : vector<2x128xf32> to vector<2x32xf32>
    %251 = vector.extract_strided_slice %248 {offsets = [0, 32], sizes = [2, 32], strides = [1, 1]} : vector<2x128xf32> to vector<2x32xf32>
    %252 = vector.extract_strided_slice %249 {offsets = [0, 64], sizes = [2, 32], strides = [1, 1]} : vector<2x128xf32> to vector<2x32xf32>
    %253 = vector.extract_strided_slice %248 {offsets = [0, 96], sizes = [2, 32], strides = [1, 1]} : vector<2x128xf32> to vector<2x32xf32>
    %254 = arith.mulf %251, %218 : vector<2x32xf32>
    %255 = arith.mulf %250, %252 : vector<2x32xf32>
    %256 = arith.addf %254, %255 : vector<2x32xf32>
    %257 = math.tanh %256 : vector<2x32xf32>
    %258 = arith.mulf %253, %257 : vector<2x32xf32>
    %259 = vector.extract_strided_slice %23 {offsets = [0, 6, 0], sizes = [2, 1, 128], strides = [1, 1, 1]} : vector<2x8x128xf32> to vector<2x1x128xf32>
    %260 = vector.shape_cast %259 : vector<2x1x128xf32> to vector<2x128xf32>
    %cst_48 = arith.constant dense<0.000000e+00> : vector<2x128xf32>
    %261 = tpu.matmul %239, %24, %cst_48 {dimension_numbers = #tpu.dot_dimension_numbers<[1], [0], [0], [1], [0, 0, 1, 1], [], []>} : vector<2x32xf32>, vector<32x128xf32>, vector<2x128xf32> -> vector<2x128xf32>
    %262 = arith.addf %260, %261 : vector<2x128xf32>
    %263 = arith.negf %262 : vector<2x128xf32>
    %264 = math.exp %263 : vector<2x128xf32>
    %cst_49 = arith.constant 1.000000e+00 : f32
    %265 = vector.broadcast %cst_49 : f32 to vector<2x128xf32>
    %266 = arith.addf %265, %264 : vector<2x128xf32>
    %267 = arith.divf %265, %266 : vector<2x128xf32>
    %268 = math.tanh %262 : vector<2x128xf32>
    %269 = vector.extract_strided_slice %267 {offsets = [0, 0], sizes = [2, 32], strides = [1, 1]} : vector<2x128xf32> to vector<2x32xf32>
    %270 = vector.extract_strided_slice %267 {offsets = [0, 32], sizes = [2, 32], strides = [1, 1]} : vector<2x128xf32> to vector<2x32xf32>
    %271 = vector.extract_strided_slice %268 {offsets = [0, 64], sizes = [2, 32], strides = [1, 1]} : vector<2x128xf32> to vector<2x32xf32>
    %272 = vector.extract_strided_slice %267 {offsets = [0, 96], sizes = [2, 32], strides = [1, 1]} : vector<2x128xf32> to vector<2x32xf32>
    %273 = arith.mulf %270, %237 : vector<2x32xf32>
    %274 = arith.mulf %269, %271 : vector<2x32xf32>
    %275 = arith.addf %273, %274 : vector<2x32xf32>
    %276 = math.tanh %275 : vector<2x32xf32>
    %277 = arith.mulf %272, %276 : vector<2x32xf32>
    %278 = tpu.concatenate %277, %258 in 1 : vector<2x32xf32>, vector<2x32xf32> -> vector<2x64xf32>
    %cst_50 = arith.constant dense<0.000000e+00> : vector<2x128xf32>
    %279 = tpu.matmul %278, %25, %cst_50 {dimension_numbers = #tpu.dot_dimension_numbers<[1], [0], [0], [1], [0, 0, 1, 1], [], []>} : vector<2x64xf32>, vector<64x128xf32>, vector<2x128xf32> -> vector<2x128xf32>
    %280 = vector.broadcast %26 : vector<1x128xf32> to vector<2x128xf32>
    %281 = arith.addf %279, %280 : vector<2x128xf32>
    %282 = arith.negf %281 : vector<2x128xf32>
    %283 = math.exp %282 : vector<2x128xf32>
    %cst_51 = arith.constant 1.000000e+00 : f32
    %284 = vector.broadcast %cst_51 : f32 to vector<2x128xf32>
    %285 = arith.addf %284, %283 : vector<2x128xf32>
    %286 = arith.divf %284, %285 : vector<2x128xf32>
    %287 = math.tanh %281 : vector<2x128xf32>
    %288 = vector.extract_strided_slice %286 {offsets = [0, 0], sizes = [2, 32], strides = [1, 1]} : vector<2x128xf32> to vector<2x32xf32>
    %289 = vector.extract_strided_slice %286 {offsets = [0, 32], sizes = [2, 32], strides = [1, 1]} : vector<2x128xf32> to vector<2x32xf32>
    %290 = vector.extract_strided_slice %287 {offsets = [0, 64], sizes = [2, 32], strides = [1, 1]} : vector<2x128xf32> to vector<2x32xf32>
    %291 = vector.extract_strided_slice %286 {offsets = [0, 96], sizes = [2, 32], strides = [1, 1]} : vector<2x128xf32> to vector<2x32xf32>
    %292 = arith.mulf %289, %256 : vector<2x32xf32>
    %293 = arith.mulf %288, %290 : vector<2x32xf32>
    %294 = arith.addf %292, %293 : vector<2x32xf32>
    %295 = math.tanh %294 : vector<2x32xf32>
    %296 = arith.mulf %291, %295 : vector<2x32xf32>
    %297 = vector.extract_strided_slice %23 {offsets = [0, 7, 0], sizes = [2, 1, 128], strides = [1, 1, 1]} : vector<2x8x128xf32> to vector<2x1x128xf32>
    %298 = vector.shape_cast %297 : vector<2x1x128xf32> to vector<2x128xf32>
    %cst_52 = arith.constant dense<0.000000e+00> : vector<2x128xf32>
    %299 = tpu.matmul %277, %24, %cst_52 {dimension_numbers = #tpu.dot_dimension_numbers<[1], [0], [0], [1], [0, 0, 1, 1], [], []>} : vector<2x32xf32>, vector<32x128xf32>, vector<2x128xf32> -> vector<2x128xf32>
    %300 = arith.addf %298, %299 : vector<2x128xf32>
    %301 = arith.negf %300 : vector<2x128xf32>
    %302 = math.exp %301 : vector<2x128xf32>
    %cst_53 = arith.constant 1.000000e+00 : f32
    %303 = vector.broadcast %cst_53 : f32 to vector<2x128xf32>
    %304 = arith.addf %303, %302 : vector<2x128xf32>
    %305 = arith.divf %303, %304 : vector<2x128xf32>
    %306 = math.tanh %300 : vector<2x128xf32>
    %307 = vector.extract_strided_slice %305 {offsets = [0, 0], sizes = [2, 32], strides = [1, 1]} : vector<2x128xf32> to vector<2x32xf32>
    %308 = vector.extract_strided_slice %305 {offsets = [0, 32], sizes = [2, 32], strides = [1, 1]} : vector<2x128xf32> to vector<2x32xf32>
    %309 = vector.extract_strided_slice %306 {offsets = [0, 64], sizes = [2, 32], strides = [1, 1]} : vector<2x128xf32> to vector<2x32xf32>
    %310 = vector.extract_strided_slice %305 {offsets = [0, 96], sizes = [2, 32], strides = [1, 1]} : vector<2x128xf32> to vector<2x32xf32>
    %311 = arith.mulf %308, %275 : vector<2x32xf32>
    %312 = arith.mulf %307, %309 : vector<2x32xf32>
    %313 = arith.addf %311, %312 : vector<2x32xf32>
    %314 = math.tanh %313 : vector<2x32xf32>
    %315 = arith.mulf %310, %314 : vector<2x32xf32>
    %316 = tpu.concatenate %315, %296 in 1 : vector<2x32xf32>, vector<2x32xf32> -> vector<2x64xf32>
    %cst_54 = arith.constant dense<0.000000e+00> : vector<2x128xf32>
    %317 = tpu.matmul %316, %25, %cst_54 {dimension_numbers = #tpu.dot_dimension_numbers<[1], [0], [0], [1], [0, 0, 1, 1], [], []>} : vector<2x64xf32>, vector<64x128xf32>, vector<2x128xf32> -> vector<2x128xf32>
    %318 = vector.broadcast %26 : vector<1x128xf32> to vector<2x128xf32>
    %319 = arith.addf %317, %318 : vector<2x128xf32>
    %320 = arith.negf %319 : vector<2x128xf32>
    %321 = math.exp %320 : vector<2x128xf32>
    %cst_55 = arith.constant 1.000000e+00 : f32
    %322 = vector.broadcast %cst_55 : f32 to vector<2x128xf32>
    %323 = arith.addf %322, %321 : vector<2x128xf32>
    %324 = arith.divf %322, %323 : vector<2x128xf32>
    %325 = math.tanh %319 : vector<2x128xf32>
    %326 = vector.extract_strided_slice %324 {offsets = [0, 0], sizes = [2, 32], strides = [1, 1]} : vector<2x128xf32> to vector<2x32xf32>
    %327 = vector.extract_strided_slice %324 {offsets = [0, 32], sizes = [2, 32], strides = [1, 1]} : vector<2x128xf32> to vector<2x32xf32>
    %328 = vector.extract_strided_slice %325 {offsets = [0, 64], sizes = [2, 32], strides = [1, 1]} : vector<2x128xf32> to vector<2x32xf32>
    %329 = vector.extract_strided_slice %324 {offsets = [0, 96], sizes = [2, 32], strides = [1, 1]} : vector<2x128xf32> to vector<2x32xf32>
    %330 = arith.mulf %327, %294 : vector<2x32xf32>
    %331 = arith.mulf %326, %328 : vector<2x32xf32>
    %332 = arith.addf %330, %331 : vector<2x32xf32>
    %333 = math.tanh %332 : vector<2x32xf32>
    %334 = arith.mulf %329, %333 : vector<2x32xf32>
    %335 = vector.shape_cast %68 : vector<2x32xf32> to vector<2x1x32xf32>
    %336 = vector.shape_cast %106 : vector<2x32xf32> to vector<2x1x32xf32>
    %337 = vector.shape_cast %144 : vector<2x32xf32> to vector<2x1x32xf32>
    %338 = vector.shape_cast %182 : vector<2x32xf32> to vector<2x1x32xf32>
    %339 = vector.shape_cast %220 : vector<2x32xf32> to vector<2x1x32xf32>
    %340 = vector.shape_cast %258 : vector<2x32xf32> to vector<2x1x32xf32>
    %341 = vector.shape_cast %296 : vector<2x32xf32> to vector<2x1x32xf32>
    %342 = vector.shape_cast %334 : vector<2x32xf32> to vector<2x1x32xf32>
    %343 = tpu.concatenate %335, %336, %337, %338, %339, %340, %341, %342 in 1 : vector<2x1x32xf32>, vector<2x1x32xf32>, vector<2x1x32xf32>, vector<2x1x32xf32>, vector<2x1x32xf32>, vector<2x1x32xf32>, vector<2x1x32xf32>, vector<2x1x32xf32> -> vector<2x8x32xf32>
    %c0_56 = arith.constant 0 : index
    %c0_57 = arith.constant 0 : index
    %344 = vector.load %arg8[%c0_56, %c0_57] : memref<1x32xf32, #tpu.memory_space<vmem>>, vector<1x32xf32>
    %c0_58 = arith.constant 0 : index
    %c0_59 = arith.constant 0 : index
    %345 = vector.load %arg9[%c0_58, %c0_59] : memref<1x1xf32, #tpu.memory_space<vmem>>, vector<1x1xf32>
    %346 = vector.shape_cast %344 : vector<1x32xf32> to vector<1x1x32xf32>
    %347 = vector.broadcast %346 : vector<1x1x32xf32> to vector<2x8x32xf32>
    %348 = arith.mulf %343, %347 : vector<2x8x32xf32>
    %cst_60 = arith.constant dense<0.000000e+00> : vector<2x8xf32>
    %349 = vector.multi_reduction <add>, %348, %cst_60 [2] : vector<2x8x32xf32> to vector<2x8xf32>
    %350 = vector.shape_cast %349 : vector<2x8xf32> to vector<2x8x1xf32>
    %351 = vector.shape_cast %345 : vector<1x1xf32> to vector<1x1x1xf32>
    %352 = vector.broadcast %351 : vector<1x1x1xf32> to vector<2x8x1xf32>
    %353 = arith.addf %350, %352 : vector<2x8x1xf32>
    %c0_61 = arith.constant 0 : index
    %c0_62 = arith.constant 0 : index
    %c0_63 = arith.constant 0 : index
    %354 = vector.load %arg10[%c0_61, %c0_62, %c0_63] : memref<2x8x1xf32, #tpu.memory_space<vmem>>, vector<2x8x1xf32>
    tpu.vector_store %arg10[%c0_61, %c0_62, %c0_63], %353 {strides = array<i32>} : memref<2x8x1xf32, #tpu.memory_space<vmem>>, vector<2x8x1xf32>,
    return
  }
}

</mosaic_0001>

<bundles_post_ra>
// kernel: lstm_model_forward.1
= control target key start
LH: loop header
LB: loop body
LE: loop exit
PB: predicated region body
PF: predicated region fallthrough
CT: control target
= control target key end

     0   :  { %s4000_s0 = inlined_call_operand.vmem [shape: f32[2,4], index: 0, kind: input, shape index: {}]   ;;  %s4001_s1 = inlined_call_operand.vmem [shape: f32[2,8,4], index: 1, kind: input, shape index: {}]   ;;  %s4002_s2 = inlined_call_operand.vmem [shape: f32[4,128], index: 2, kind: input, shape index: {}]   ;;  %s4003_s3 = inlined_call_operand.vmem [shape: f32[4,128], index: 3, kind: input, shape index: {}]   ;;  %s4004_s4 = inlined_call_operand.hbm [shape: f32[32,128], index: 4, kind: input, shape index: {}]   ;;  %s4005_s5 = inlined_call_operand.vmem [shape: f32[1,128], index: 5, kind: input, shape index: {}]   ;;  %s4006_s6 = inlined_call_operand.hbm [shape: f32[64,128], index: 6, kind: input, shape index: {}]   ;;  %s4007_s7 = inlined_call_operand.vmem [shape: f32[1,128], index: 7, kind: input, shape index: {}]   ;;  %s4008_s8 = inlined_call_operand.vmem [shape: f32[1,32], index: 8, kind: input, shape index: {}]   ;;  %s4009_s9 = inlined_call_operand.<no memory space> [shape: f32[1,1], index: 9, kind: input, shape index: {}]   ;;  %s4010_s10 = inlined_call_operand.vmem [shape: f32[2,8,1], index: 10, kind: output, shape index: {}]  }
   0x1   :  { %v15_v0 = vstv %s4009_s9 }
   0x2   :  { %16 = vst [vmem:[#allocation2] sm:$0x1] %v15_v0 }
   0x3   :  { %17 = vsyncpa [#allocation4], 0 }
   0x4   :  { %18 = vsyncpa [#allocation6], 0  ;;  %s3276_s15 = smov [#allocation3]  }
   0x5   :  { %s32_s16 = sshll.u32 %s3276_s15, 4  ;;  %s33_s16 = int_to_ptr.vmem [resolvable:$true] %s32_s16 }
   0x6   :  { %s3240_s17 = scalar_lea.vmem %s33_s16, 512  ;;  %p3245_p1 = scmp.lt.s32.totalorder %s33_s16, %s33_s16 }
   0x7   :  { %p3241_p0 = scmp.ne.s32.totalorder %s33_s16, %s3240_s17  ;;  %p3246_p2 = scmp.lt.s32.totalorder %s3240_s17, %s3240_s17 }
   0x9   :  { %p3247_p3 = por %p3246_p2, %p3245_p1 }
   0xb   :  { %p3248_p4 = pnand %p3247_p3, %p3241_p0 }
   0xd   :  { %3251 = shalt.err (!%p3248_p4)
}
   0xe   :  { %s3277_s18 = smov 128   ;;  %s3278_s19 = smov 8  }
   0xf   :  { %38 = dma.hbm_to_vmem [thread:$0]  %s4004_s4, 512, %s33_s16, [#allocation4], %s3277_s18, %s3277_s18, %s3278_s19  }
  0x10   :  { %s3279_s9 = smov [#allocation5]  }
  0x11   :  { %s46_s22 = sshll.u32 %s3279_s9, 4  ;;  %s47_s22 = int_to_ptr.vmem [resolvable:$true] %s46_s22 }
  0x12   :  { %s3260_s23 = scalar_lea.vmem %s47_s22, 1024  ;;  %p3265_p6 = scmp.lt.s32.totalorder %s47_s22, %s47_s22 }
  0x13   :  { %p3261_p5 = scmp.ne.s32.totalorder %s47_s22, %s3260_s23  ;;  %p3266_p7 = scmp.lt.s32.totalorder %s3260_s23, %s3260_s23 }
  0x15   :  { %p3267_p8 = por %p3266_p7, %p3265_p6 }
  0x17   :  { %p3268_p9 = pnand %p3267_p8, %p3261_p5 }
  0x19   :  { %3271 = shalt.err (!%p3268_p9)
}
  0x1a   :  { %52 = dma.hbm_to_vmem [thread:$0]  %s4006_s6, 1024, %s47_s22, [#allocation6], %s3277_s18, %s3277_s18, %s3278_s19  }
  0x1b   :  { %3272 = dma.done.wait [#allocation4], 512  }
  0x1c   :  { %3273 = vsyncadd [#allocation4], 4294966784 }
  0x1d   :  { %3274 = dma.done.wait [#allocation6], 1024  }
  0x1e   :  { %3275 = vsyncadd [#allocation6], 4294966272  ;;  %v3280_v1 = vmov 0.0   ;;  %vm3281_vm0 = vmmov 0   ;;  %vm85_vm1 = vcmask 1043456   ;;  %vm81_vm2 = vcmask 31744  }
  0x1f   :  { %2766 = vmatprep.subr.mxu0 %v3280_v1  ;;  %2768 = vmatprep.mubr.msk.f32.mxu0 %vm3281_vm0, %v3280_v1  ;;  %v65_v2 = vld [vmem:[%s4000_s0] sm:$0x3]  ;;  %v77_v7 = vld [vmem:[%s4001_s1 + $0x8] sm:$0xff]  ;;  %v3378_v12 = vld [vmem:[#allocation3 + $0x10] sm:$0xff]  ;;  %vm72_vm3 = vcmask 7168   ;;  %vm74_vm4 = vcmask 15360   ;;  %v248_v24 = vlaneseq }
  0x20   :  { %v159_v3 = vld [vmem:[%s4003_s3] sm:$0xf]  ;;  %v66_v5 = vmul.f32 0.33333334, %v65_v2  ;;  %v79_v9 = vmul.f32 0.2, %v77_v7 }
  0x21   :  { %v80_v4 = vld [vmem:[%s4002_s2] sm:$0xf]  ;;  %2771 = vmatprep.subr.msk.mxu1 %vm85_vm1, %v159_v3  ;;  %s3282_s2 = smov 127   ;;  %v3384_v13 = vld [vmem:[#allocation3 + $0x8] sm:$0xff]  ;;  %v3283_v22 = vmov 1966171168  }
  0x22   :  { %2767 = vmatpush3.msk.msra.mxu0 %vm85_vm1, %v80_v4  ;;  %v76_v6 = vld [vmem:[%s4001_s1] sm:$0xff]  ;;  %2772 = vmatpush3.msk.msra.mxu1 %vm85_vm1, %v159_v3  ;;  %v67_v10 = vmul.f32 0.033333335, %v66_v5  ;;  %v246_v23 = vunpack.c.l.s4 %v3283_v22  ;;  %v249_v26 = vshrl.u32 %v248_v24, 7  ;;  %s3284_s13 = smov 64   ;;  %v3439_v3 = vld [vmem:[#allocation5 + $0x30] sm:$0xff] }
  0x23   :  { %v78_v8 = vmul.f32 0.2, %v76_v6  ;;  %2806 = vmatprep.subr.mxu0 %v3280_v1  ;;  %2776 = vmatprep.subr.mxu1 %v3280_v1  ;;  %v3374_v11 = vld [vmem:[#allocation3 + $0x18] sm:$0xff]  ;;  %v3388_v14 = vld [vmem:[#allocation3] sm:$0xff]  ;;  %v3443_v4 = vld [vmem:[#allocation5 + $0x28] sm:$0xff]  ;;  %vm432_vm5 = vcmask 1041409  }
  0x24   :  { %69 = vrot.lane.b32.xlu0 %v67_v10, %s3282_s2  ;;  %v247_v25 = vunpack.c.0.s8 %v246_v23  ;;  %v3412_v30 = vsub.s32 0, %v249_v26  ;;  %v2606_v36 = vld [vmem:[%s4005_s5] ss:$0 sm:$0xff]  ;;  %s3285_s5 = smov 32   ;;  %v3447_v6 = vld [vmem:[#allocation5 + $0x20] sm:$0xff]  ;;  %v3461_v10 = vld [vmem:[#allocation5 + $0x8] sm:$0xff] }
  0x25   :  { %2773 = vmatprep.mubr.msk.f32.mxu1 %vm81_vm2, %v78_v8  ;;  %v3452_v7 = vld [vmem:[#allocation5 + $0x18] sm:$0xff]  ;;  %vm301_vm6 = vcmask 261120   ;;  %vm444_vm7 = vcmask 523264   ;;  %vm677_vm8 = vcmask 1042434   ;;  %vm926_vm9 = vcmask 1043459   ;;  %s3286_s19 = smov 96  }
  0x26   :  { %2774 = vmatmul.mubr.msk.f32.vlgmr.msra.gmra.mxu1 %vm81_vm2, %v79_v9  ;;  %v3409_v27 = vsub.s32 %v247_v25, %v249_v26  ;;  %v3457_v9 = vld [vmem:[#allocation5 + $0x10] sm:$0xff]  ;;  %vm2191_vm10 = vcmask 1040384   ;;  %vm1176_vm11 = vcmask 1044484   ;;  %vm2542_vm12 = vcmask 1041408  }
  0x27   :  { %2777 = vmatpush3.msra.mxu1 %v3374_v11  ;;  %2784 = vmatprep.mubr.msk.f32.mxu1 %vm3281_vm0, %v3280_v1  ;;  %vm1426_vm13 = vcmask 1045509   ;;  %vm2545_vm14 = vcmask 1042432   ;;  %vm1676_vm15 = vcmask 1046534  }
  0x28   :  { %2778 = vmatprep.subr.mxu1 %v3280_v1 }
  0x29   :  { %2779 = vmatpush3.msra.mxu1 %v3378_v12 }
  0x2a   :  { %2780 = vmatprep.subr.mxu1 %v3280_v1 }
  0x2b   :  { %2781 = vmatpush3.msra.mxu1 %v3384_v13 }
  0x2c   :  { %2782 = vmatprep.subr.mxu1 %v3280_v1 }
  0x2d   :  { %2783 = vmatpush3.msra.mxu1 %v3388_v14 }
  0x2e   :  { %2785 = vmatmul.mubr.f32.vlgmr.msra.gmra.mxu1 %v3280_v1  ;;  %2787 = vmatprep.subr.mxu1 %v3280_v1 }
  0x2f   :  { %2803 = vmatprep.mubr.msk.f32.mxu1 %vm3281_vm0, %v3280_v1 }
  0x96   :  { %v70_v15 = vpop.permute.xlu0 %69 }
  0x97   :  { %v73_v16 = vsel %vm72_vm3, %v70_v15, %v66_v5  ;;  %v3467_v15 = vld [vmem:[#allocation5] sm:$0xff] }
  0x98   :  { %v75_v17 = vsel %vm74_vm4, %v73_v16, %v65_v2  ;;  %v3437_v2 = vld [vmem:[#allocation5 + $0x38] sm:$0xff]  ;;  %vm2556_vm4 = vcmask 1046528  }
  0x99   :  { %2769 = vmatmul.mubr.msk.f32.vlgmr.msra.gmra.mxu0 %vm81_vm2, %v75_v17  ;;  %2788 = vmatpush3.msra.mxu1 %v3437_v2  ;;  %vm2550_vm2 = vcmask 1044480  }
  0x9a   :  { %2807 = vmatpush3.msra.mxu0 %v3374_v11  ;;  %2814 = vmatprep.mubr.msk.f32.mxu0 %vm3281_vm0, %v3280_v1 }
  0x9b   :  { %2808 = vmatprep.subr.mxu0 %v3280_v1  ;;  %2789 = vmatprep.subr.mxu1 %v3280_v1 }
  0x9c   :  { %2809 = vmatpush3.msra.mxu0 %v3378_v12  ;;  %2790 = vmatpush3.msra.mxu1 %v3439_v3 }
  0x9d   :  { %2810 = vmatprep.subr.mxu0 %v3280_v1  ;;  %2791 = vmatprep.subr.mxu1 %v3280_v1 }
  0x9e   :  { %2811 = vmatpush3.msra.mxu0 %v3384_v13  ;;  %2792 = vmatpush3.msra.mxu1 %v3443_v4 }
  0x9f   :  { %2812 = vmatprep.subr.mxu0 %v3280_v1  ;;  %2793 = vmatprep.subr.mxu1 %v3280_v1 }
  0xa0   :  { %2813 = vmatpush3.msra.mxu0 %v3388_v14  ;;  %2794 = vmatpush3.msra.mxu1 %v3447_v6 }
  0xa1   :  { %2817 = vmatprep.subr.mxu0 %v3280_v1  ;;  %2795 = vmatprep.subr.mxu1 %v3280_v1 }
  0xa2   :  { %2796 = vmatpush3.msra.mxu1 %v3452_v7 }
  0xa3   :  { %2797 = vmatprep.subr.mxu1 %v3280_v1 }
  0xa4   :  { %2798 = vmatpush3.msra.mxu1 %v3457_v9 }
  0xa5   :  { %2799 = vmatprep.subr.mxu1 %v3280_v1 }
  0xa6   :  { %2800 = vmatpush3.msra.mxu1 %v3461_v10 }
  0xa7   :  { %2801 = vmatprep.subr.mxu1 %v3280_v1 }
  0xa8   :  { %2802 = vmatpush3.msra.mxu1 %v3467_v15 }
  0xa9   :  { %2836 = vmatprep.subr.mxu1 %v3280_v1 }
  0xe6   :  { %v2775_v18 = vpop.f32.mrf.mxu1 }
  0xe8   :  { %v235_v19 = vpop.f32.mrf.mxu1 }
  0xee   :  { %v371_v20 = vpop.f32.mrf.mxu1 }
  0xef   :  { %v376_v41 = vrot.slane %v371_v20, 1 }
  0xf0   :  { %v2786_v21 = vpop.f32.mrf.mxu1 }
 0x159   :  { %v155_v28 = vpop.f32.mrf.mxu0 }
 0x15a   :  { %v251_v29 = vrot.slane %v155_v28, %v3409_v27 }
 0x15b   :  { %v2770_v31 = vpop.f32.mrf.mxu0 }
 0x15c   :  { %v252_v32 = vcombine.high %v251_v29, %v251_v29  ;;  %v259_v33 = vrot.slane %v251_v29, %v3409_v27 }
 0x15e   :  { %v266_v34 = vrot.slane %v252_v32, %v3409_v27  ;;  %v270_v35 = vrot.slane %v259_v33, %v3412_v30  ;;  %v3509_v32 = vld [vmem:[%s4007_s7] ss:$0 sm:$0xff] }
 0x160   :  { %v274_v37 = vrot.slane %v266_v34, %v3412_v30  ;;  %v277_v38 = vadd.f32 %v270_v35, %v235_v19 }
 0x162   :  { %v278_v39 = vadd.f32 %v2775_v18, %v274_v37  ;;  %v3421_v40 = vadd.f32 %v2606_v36, %v277_v38 }
 0x164   :  { %v3423_v42 = vadd.f32 %v2606_v36, %v278_v39  ;;  %v379_v43 = vadd.f32 %v371_v20, %v3421_v40 }
 0x166   :  { %v380_v44 = vadd.f32 %v376_v41, %v3423_v42  ;;  %3027 = vtanh.f32 %v379_v43  ;;  %v2607_v47 = vmul.f32 -1.442695, %v379_v43 }
 0x168   :  { %3029 = vtanh.f32 %v380_v44  ;;  %v2608_v48 = vmul.f32 -1.442695, %v380_v44 }
 0x169   :  { %3031 = vpow2.f32 %v2607_v47 }
 0x16a   :  { %3033 = vpow2.f32 %v2608_v48 }
 0x173   :  { %v3028_v45 = vpop.eup %3027 }
 0x174   :  { %399 = vrot.lane.b32.xlu1 %v3028_v45, %s3284_s13 }
 0x175   :  { %v3030_v46 = vpop.eup %3029 }
 0x176   :  { %401 = vrot.lane.b32.xlu0 %v3030_v46, %s3284_s13  ;;  %v3032_v49 = vpop.eup %3031 }
 0x177   :  { %v3034_v50 = vpop.eup %3033  ;;  %v387_v51 = vadd.f32 1.0, %v3032_v49 }
 0x178   :  { %v388_v52 = vadd.f32 1.0, %v3034_v50 }
 0x179   :  { %3035 = vrcp.f32 %v387_v51 }
 0x17a   :  { %3037 = vrcp.f32 %v388_v52 }
 0x186   :  { %v3036_v53 = vpop.eup %3035 }
 0x187   :  { %v3038_v56 = vpop.eup %3037  ;;  %v395_v59 = vmul.f32 0.0, %v3036_v53 }
 0x188   :  { %v396_v62 = vmul.f32 0.0, %v3038_v56 }
 0x1e6   :  { %v400_v54 = vpop.permute.xlu1 %399 }
 0x1e7   :  { %v405_v55 = vmul.f32 %v3036_v53, %v400_v54 }
 0x1e8   :  { %v402_v57 = vpop.permute.xlu0 %401 }
 0x1e9   :  { %409 = vrot.lane.b32.xlu0 %v405_v55, %s3285_s5  ;;  %v406_v58 = vmul.f32 %v3038_v56, %v402_v57 }
 0x1eb   :  { %411 = vrot.lane.b32.xlu1 %v406_v58, %s3285_s5 }
 0x25b   :  { %v410_v60 = vpop.permute.xlu0 %409 }
 0x25c   :  { %v3431_v61 = vadd.f32 %v410_v60, %v395_v59 }
 0x25d   :  { %v412_v63 = vpop.permute.xlu1 %411 }
 0x25e   :  { %3039 = vtanh.f32 %v3431_v61  ;;  %v3434_v0 = vadd.f32 %v412_v63, %v396_v62  ;;  %v636_v60 = vrot.slane %v3431_v61, 7 }
 0x260   :  { %3041 = vtanh.f32 %v3434_v0  ;;  %v637_v58 = vrot.slane %v3434_v0, 7 }
 0x26b   :  { %v3040_v5 = vpop.eup %3039 }
 0x26c   :  { %421 = vrot.lane.b32.xlu0 %v3040_v5, %s3284_s13 }
 0x26d   :  { %v3042_v8 = vpop.eup %3041 }
 0x26e   :  { %423 = vrot.lane.b32.xlu1 %v3042_v8, %s3284_s13 }
 0x2de   :  { %v422_v16 = vpop.permute.xlu0 %421 }
 0x2df   :  { %v427_v19 = vmul.f32 %v3036_v53, %v422_v16 }
 0x2e0   :  { %v424_v17 = vpop.permute.xlu1 %423 }
 0x2e1   :  { %v428_v18 = vmul.f32 %v3038_v56, %v424_v17 }
 0x2e3   :  { %v431_v20 = vrot.slane %v428_v18, 7 }
 0x2e5   :  { %v433_v21 = vsel %vm432_vm5, %v431_v20, %v427_v19 }
 0x2e6   :  { %434 = vrot.lane.b32.xlu1 %v433_v21, %s3285_s5 }
 0x358   :  { %v435_v22 = vpop.permute.xlu1 %434 }
 0x359   :  { %v437_v23 = vsel %vm301_vm6, %v435_v22, 0.0  ;;  %2815 = vmatmul.mubr.msk.f32.vlgmr.msra.gmra.mxu0 %vm301_vm6, %v435_v22 }
 0x35a   :  { %2804 = vmatmul.mubr.msk.f32.vlgmr.msra.gmra.mxu1 %vm444_vm7, %v437_v23  ;;  %2818 = vmatpush3.msra.mxu0 %v3437_v2 }
 0x35b   :  { %2819 = vmatprep.subr.mxu0 %v3280_v1  ;;  %2837 = vmatpush3.msra.mxu1 %v3374_v11 }
 0x35c   :  { %2820 = vmatpush3.msra.mxu0 %v3439_v3  ;;  %2838 = vmatprep.subr.mxu1 %v3280_v1 }
 0x35d   :  { %2821 = vmatprep.subr.mxu0 %v3280_v1  ;;  %2839 = vmatpush3.msra.mxu1 %v3378_v12 }
 0x35e   :  { %2822 = vmatpush3.msra.mxu0 %v3443_v4  ;;  %2840 = vmatprep.subr.mxu1 %v3280_v1 }
 0x35f   :  { %2823 = vmatprep.subr.mxu0 %v3280_v1  ;;  %2841 = vmatpush3.msra.mxu1 %v3384_v13 }
 0x360   :  { %2824 = vmatpush3.msra.mxu0 %v3447_v6  ;;  %2842 = vmatprep.subr.mxu1 %v3280_v1 }
 0x361   :  { %2825 = vmatprep.subr.mxu0 %v3280_v1  ;;  %2843 = vmatpush3.msra.mxu1 %v3388_v14 }
 0x362   :  { %2826 = vmatpush3.msra.mxu0 %v3452_v7  ;;  %2844 = vmatprep.mubr.msk.f32.mxu1 %vm3281_vm0, %v3280_v1 }
 0x363   :  { %2827 = vmatprep.subr.mxu0 %v3280_v1  ;;  %2833 = vmatprep.mubr.msk.f32.mxu0 %vm3281_vm0, %v3280_v1 }
 0x364   :  { %2828 = vmatpush3.msra.mxu0 %v3457_v9  ;;  %2847 = vmatprep.subr.mxu1 %v3280_v1 }
 0x365   :  { %2829 = vmatprep.subr.mxu0 %v3280_v1 }
 0x366   :  { %2830 = vmatpush3.msra.mxu0 %v3461_v10 }
 0x367   :  { %2831 = vmatprep.subr.mxu0 %v3280_v1 }
 0x368   :  { %2832 = vmatpush3.msra.mxu0 %v3467_v15 }
 0x369   :  { %2866 = vmatprep.subr.mxu0 %v3280_v1 }
 0x419   :  { %v610_v24 = vpop.f32.mrf.mxu0 }
 0x41a   :  { %v615_v25 = vrot.slane %v610_v24, 7  ;;  %v619_v26 = vadd.f32 %v610_v24, %v3423_v42  ;;  %v514_v28 = vpop.f32.mrf.mxu1 }
 0x41b   :  { %v2816_v29 = vpop.f32.mrf.mxu0  ;;  %v515_v34 = vadd.f32 %v3509_v32, %v514_v28 }
 0x41c   :  { %v618_v31 = vadd.f32 %v615_v25, %v3421_v40  ;;  %3043 = vtanh.f32 %v619_v26  ;;  %v2805_v33 = vpop.f32.mrf.mxu1  ;;  %v2614_v38 = vmul.f32 -1.442695, %v619_v26 }
 0x41d   :  { %v2611_v41 = vmul.f32 -1.442695, %v515_v34 }
 0x41e   :  { %3045 = vtanh.f32 %v618_v31  ;;  %v2613_v39 = vmul.f32 -1.442695, %v618_v31 }
 0x41f   :  { %3047 = vtanh.f32 %v515_v34 }
 0x420   :  { %3049 = vpow2.f32 %v2614_v38 }
 0x421   :  { %3051 = vpow2.f32 %v2613_v39 }
 0x422   :  { %3053 = vpow2.f32 %v2611_v41 }
 0x429   :  { %v3044_v35 = vpop.eup %3043 }
 0x42a   :  { %646 = vrot.lane.b32.xlu1 %v3044_v35, %s3284_s13 }
 0x42b   :  { %v3046_v36 = vpop.eup %3045 }
 0x42c   :  { %644 = vrot.lane.b32.xlu0 %v3046_v36, %s3284_s13  ;;  %v3048_v37 = vpop.eup %3047 }
 0x42d   :  { %v3050_v43 = vpop.eup %3049 }
 0x42e   :  { %v3052_v44 = vpop.eup %3051  ;;  %v627_v45 = vadd.f32 1.0, %v3050_v43 }
 0x42f   :  { %v626_v46 = vadd.f32 1.0, %v3052_v44  ;;  %v3054_v47 = vpop.eup %3053 }
 0x430   :  { %527 = vrot.lane.b32.xlu0 %v3048_v37, %s3284_s13  ;;  %3055 = vrcp.f32 %v627_v45  ;;  %v521_v48 = vadd.f32 1.0, %v3054_v47 }
 0x431   :  { %3057 = vrcp.f32 %v626_v46 }
 0x432   :  { %3059 = vrcp.f32 %v521_v48 }
 0x43d   :  { %v3056_v49 = vpop.eup %3055 }
 0x43e   :  { %v3058_v52 = vpop.eup %3057  ;;  %v641_v59 = vmul.f32 %v3056_v49, %v637_v58 }
 0x43f   :  { %v3060_v55 = vpop.eup %3059  ;;  %v640_v5 = vmul.f32 %v3058_v52, %v636_v60 }
 0x440   :  { %v525_v17 = vmul.f32 0.0, %v3060_v55 }
 0x49c   :  { %v647_v50 = vpop.permute.xlu1 %646 }
 0x49d   :  { %v651_v51 = vmul.f32 %v3056_v49, %v647_v50 }
 0x49e   :  { %v645_v53 = vpop.permute.xlu0 %644 }
 0x49f   :  { %656 = vrot.lane.b32.xlu0 %v651_v51, %s3285_s5  ;;  %v650_v54 = vmul.f32 %v3058_v52, %v645_v53 }
 0x4a1   :  { %654 = vrot.lane.b32.xlu1 %v650_v54, %s3285_s5 }
 0x4a2   :  { %v528_v56 = vpop.permute.xlu0 %527 }
 0x4a3   :  { %v530_v57 = vmul.f32 %v3060_v55, %v528_v56 }
 0x4a5   :  { %532 = vrot.lane.b32.xlu1 %v530_v57, %s3285_s5 }
 0x511   :  { %v657_v62 = vpop.permute.xlu0 %656 }
 0x512   :  { %v3520_v63 = vadd.f32 %v657_v62, %v641_v59 }
 0x513   :  { %v655_v8 = vpop.permute.xlu1 %654 }
 0x514   :  { %3061 = vtanh.f32 %v3520_v63  ;;  %v3523_v16 = vadd.f32 %v655_v8, %v640_v5 }
 0x516   :  { %3063 = vtanh.f32 %v3523_v16 }
 0x517   :  { %v533_v18 = vpop.permute.xlu1 %532 }
 0x518   :  { %v3526_v19 = vadd.f32 %v533_v18, %v525_v17 }
 0x51a   :  { %3065 = vtanh.f32 %v3526_v19 }
 0x521   :  { %v3062_v0 = vpop.eup %3061 }
 0x522   :  { %668 = vrot.lane.b32.xlu1 %v3062_v0, %s3284_s13 }
 0x523   :  { %v3064_v61 = vpop.eup %3063 }
 0x524   :  { %666 = vrot.lane.b32.xlu0 %v3064_v61, %s3284_s13 }
 0x527   :  { %v3066_v20 = vpop.eup %3065 }
 0x528   :  { %538 = vrot.lane.b32.xlu0 %v3066_v20, %s3284_s13 }
 0x594   :  { %v669_v21 = vpop.permute.xlu1 %668 }
 0x595   :  { %v673_v22 = vmul.f32 %v3056_v49, %v669_v21 }
 0x596   :  { %v667_v24 = vpop.permute.xlu0 %666 }
 0x597   :  { %v676_v23 = vrot.slane %v673_v22, 7  ;;  %v672_v25 = vmul.f32 %v3058_v52, %v667_v24  ;;  %v885_v24 = vrot.slane %v3523_v16, 7 }
 0x599   :  { %v786_v26 = vrot.slane %v672_v25, 1  ;;  %v678_v28 = vsel %vm677_vm8, %v676_v23, %v672_v25  ;;  %v886_v25 = vrot.slane %v3520_v63, 7 }
 0x59a   :  { %679 = vrot.lane.b32.xlu1 %v678_v28, %s3285_s5  ;;  %v539_v29 = vpop.permute.xlu0 %538 }
 0x59b   :  { %v3533_v31 = vmul.f32 %v3060_v55, %v539_v29  ;;  %v787_v34 = vsel %vm432_vm5, %v673_v22, %v786_v26 }
 0x59d   :  { %v683_v33 = vrot.slane %v3533_v31, 7 }
 0x59e   :  { %788 = vrot.lane.b32.xlu1 %v787_v34, %s3285_s5 }
 0x59f   :  { %684 = vrot.lane.b32.xlu0 %v683_v33, %s3284_s13 }
 0x60c   :  { %v680_v35 = vpop.permute.xlu1 %679 }
 0x610   :  { %v789_v36 = vpop.permute.xlu1 %788 }
 0x611   :  { %2845 = vmatmul.mubr.msk.f32.vlgmr.msra.gmra.mxu1 %vm301_vm6, %v789_v36  ;;  %v685_v37 = vpop.permute.xlu0 %684 }
 0x612   :  { %v687_v38 = vsel %vm301_vm6, %v680_v35, %v685_v37  ;;  %2848 = vmatpush3.msra.mxu1 %v3437_v2  ;;  %2863 = vmatprep.mubr.msk.f32.mxu1 %vm3281_vm0, %v3280_v1 }
 0x613   :  { %v689_v39 = vrot.slane %v687_v38, 1  ;;  %2849 = vmatprep.subr.mxu1 %v3280_v1 }
 0x614   :  { %2850 = vmatpush3.msra.mxu1 %v3439_v3 }
 0x615   :  { %2834 = vmatmul.mubr.msk.f32.vlgmr.msra.gmra.mxu0 %vm444_vm7, %v689_v39  ;;  %2851 = vmatprep.subr.mxu1 %v3280_v1 }
 0x616   :  { %2852 = vmatpush3.msra.mxu1 %v3443_v4  ;;  %2867 = vmatpush3.msra.mxu0 %v3374_v11 }
 0x617   :  { %2853 = vmatprep.subr.mxu1 %v3280_v1  ;;  %2868 = vmatprep.subr.mxu0 %v3280_v1 }
 0x618   :  { %2854 = vmatpush3.msra.mxu1 %v3447_v6  ;;  %2869 = vmatpush3.msra.mxu0 %v3378_v12 }
 0x619   :  { %2855 = vmatprep.subr.mxu1 %v3280_v1  ;;  %2870 = vmatprep.subr.mxu0 %v3280_v1 }
 0x61a   :  { %2856 = vmatpush3.msra.mxu1 %v3452_v7  ;;  %2871 = vmatpush3.msra.mxu0 %v3384_v13 }
 0x61b   :  { %2857 = vmatprep.subr.mxu1 %v3280_v1  ;;  %2872 = vmatprep.subr.mxu0 %v3280_v1 }
 0x61c   :  { %2858 = vmatpush3.msra.mxu1 %v3457_v9  ;;  %2873 = vmatpush3.msra.mxu0 %v3388_v14 }
 0x61d   :  { %2859 = vmatprep.subr.mxu1 %v3280_v1  ;;  %2874 = vmatprep.mubr.msk.f32.mxu0 %vm3281_vm0, %v3280_v1 }
 0x61e   :  { %2860 = vmatpush3.msra.mxu1 %v3461_v10  ;;  %2877 = vmatprep.subr.mxu0 %v3280_v1 }
 0x61f   :  { %2861 = vmatprep.subr.mxu1 %v3280_v1 }
 0x620   :  { %2862 = vmatpush3.msra.mxu1 %v3467_v15 }
 0x621   :  { %2896 = vmatprep.subr.mxu1 %v3280_v1 }
 0x6d1   :  { %v858_v41 = vpop.f32.mrf.mxu1 }
 0x6d2   :  { %v863_v43 = vrot.slane %v858_v41, 6  ;;  %v864_v44 = vrot.slane %v858_v41, 7 }
 0x6d3   :  { %v2846_v45 = vpop.f32.mrf.mxu1 }
 0x6d4   :  { %v867_v46 = vadd.f32 %v863_v43, %v3421_v40  ;;  %v868_v47 = vadd.f32 %v864_v44, %v3423_v42 }
 0x6d5   :  { %v758_v48 = vpop.f32.mrf.mxu0 }
 0x6d6   :  { %3067 = vtanh.f32 %v867_v46  ;;  %v759_v49 = vadd.f32 %v3509_v32, %v758_v48  ;;  %v2618_v54 = vmul.f32 -1.442695, %v867_v46  ;;  %v2619_v55 = vmul.f32 -1.442695, %v868_v47 }
 0x6d7   :  { %3069 = vtanh.f32 %v868_v47  ;;  %v2835_v50 = vpop.f32.mrf.mxu0  ;;  %v2297_v46 = vrot.slane %v3533_v31, %v3409_v27 }
 0x6d8   :  { %3071 = vtanh.f32 %v759_v49  ;;  %v2616_v56 = vmul.f32 -1.442695, %v759_v49 }
 0x6d9   :  { %3073 = vpow2.f32 %v2618_v54  ;;  %v2298_v54 = vcombine.high %v2297_v46, %v2297_v46  ;;  %v2305_v31 = vrot.slane %v2297_v46, %v3409_v27 }
 0x6da   :  { %3075 = vpow2.f32 %v2619_v55 }
 0x6db   :  { %3077 = vpow2.f32 %v2616_v56 }
 0x6e3   :  { %v3068_v51 = vpop.eup %3067 }
 0x6e4   :  { %v3070_v52 = vpop.eup %3069  ;;  %893 = vrot.lane.b32.xlu0 %v3068_v51, %s3284_s13 }
 0x6e5   :  { %895 = vrot.lane.b32.xlu1 %v3070_v52, %s3284_s13  ;;  %v3072_v53 = vpop.eup %3071 }
 0x6e6   :  { %v3074_v57 = vpop.eup %3073 }
 0x6e7   :  { %v3076_v58 = vpop.eup %3075  ;;  %v875_v59 = vadd.f32 1.0, %v3074_v57 }
 0x6e8   :  { %771 = vrot.lane.b32.xlu0 %v3072_v53, %s3284_s13  ;;  %v876_v60 = vadd.f32 1.0, %v3076_v58  ;;  %v3078_v62 = vpop.eup %3077 }
 0x6e9   :  { %3079 = vrcp.f32 %v875_v59  ;;  %v765_v5 = vadd.f32 1.0, %v3078_v62 }
 0x6ea   :  { %3081 = vrcp.f32 %v876_v60  ;;  %v2312_v60 = vrot.slane %v2298_v54, %v3409_v27 }
 0x6eb   :  { %3083 = vrcp.f32 %v765_v5 }
 0x6f6   :  { %v3080_v8 = vpop.eup %3079 }
 0x6f7   :  { %v3082_v18 = vpop.eup %3081  ;;  %v889_v26 = vmul.f32 %v3080_v8, %v885_v24 }
 0x6f8   :  { %v3084_v21 = vpop.eup %3083  ;;  %v890_v29 = vmul.f32 %v3082_v18, %v886_v25 }
 0x6f9   :  { %v769_v36 = vmul.f32 %v3084_v21, %v3526_v19 }
 0x756   :  { %v894_v17 = vpop.permute.xlu0 %893 }
 0x757   :  { %v896_v0 = vpop.permute.xlu1 %895  ;;  %v899_v61 = vmul.f32 %v3080_v8, %v894_v17 }
 0x758   :  { %v900_v20 = vmul.f32 %v3082_v18, %v896_v0 }
 0x759   :  { %903 = vrot.lane.b32.xlu1 %v899_v61, %s3285_s5 }
 0x75a   :  { %905 = vrot.lane.b32.xlu0 %v900_v20, %s3285_s5  ;;  %v772_v22 = vpop.permute.xlu0 %771 }
 0x75b   :  { %v774_v23 = vmul.f32 %v3084_v21, %v772_v22 }
 0x75d   :  { %776 = vrot.lane.b32.xlu1 %v774_v23, %s3285_s5 }
 0x7cb   :  { %v904_v28 = vpop.permute.xlu1 %903 }
 0x7cc   :  { %v3581_v33 = vadd.f32 %v904_v28, %v889_v26  ;;  %v906_v34 = vpop.permute.xlu0 %905 }
 0x7cd   :  { %v3583_v35 = vadd.f32 %v906_v34, %v890_v29 }
 0x7ce   :  { %3085 = vtanh.f32 %v3581_v33 }
 0x7cf   :  { %3087 = vtanh.f32 %v3583_v35  ;;  %v777_v37 = vpop.permute.xlu1 %776 }
 0x7d0   :  { %v3588_v38 = vadd.f32 %v777_v37, %v769_v36 }
 0x7d2   :  { %3089 = vtanh.f32 %v3588_v38 }
 0x7db   :  { %v3086_v63 = vpop.eup %3085 }
 0x7dc   :  { %v3088_v16 = vpop.eup %3087  ;;  %915 = vrot.lane.b32.xlu0 %v3086_v63, %s3284_s13 }
 0x7dd   :  { %917 = vrot.lane.b32.xlu1 %v3088_v16, %s3284_s13 }
 0x7df   :  { %v3090_v39 = vpop.eup %3089 }
 0x7e0   :  { %782 = vrot.lane.b32.xlu0 %v3090_v39, %s3284_s13 }
 0x84e   :  { %v916_v41 = vpop.permute.xlu0 %915 }
 0x84f   :  { %v918_v43 = vpop.permute.xlu1 %917  ;;  %v921_v44 = vmul.f32 %v3080_v8, %v916_v41 }
 0x850   :  { %v922_v45 = vmul.f32 %v3082_v18, %v918_v43 }
 0x851   :  { %v1035_v48 = vrot.slane %v921_v44, 2 }
 0x852   :  { %v925_v19 = vrot.slane %v922_v45, 7  ;;  %v783_v47 = vpop.permute.xlu0 %782  ;;  %v1036_v49 = vrot.slane %v922_v45, 1 }
 0x853   :  { %v785_v50 = vmul.f32 %v3084_v21, %v783_v47 }
 0x854   :  { %v927_v51 = vsel %vm926_vm9, %v925_v19, %v921_v44  ;;  %v1037_v57 = vsel %vm432_vm5, %v1036_v49, %v1035_v48 }
 0x855   :  { %928 = vrot.lane.b32.xlu1 %v927_v51, %s3285_s5  ;;  %v932_v52 = vrot.slane %v785_v50, 6  ;;  %v2321_v53 = vrot.slane %v785_v50, %v3409_v27 }
 0x857   :  { %v2322_v55 = vcombine.high %v2321_v53, %v2321_v53  ;;  %v2329_v56 = vrot.slane %v2321_v53, %v3409_v27  ;;  %933 = vrot.lane.b32.xlu0 %v932_v52, %s3284_s13 }
 0x859   :  { %1038 = vrot.lane.b32.xlu1 %v1037_v57, %s3285_s5  ;;  %v2336_v58 = vrot.slane %v2322_v55, %v3409_v27  ;;  %v2473_v59 = vrot.slane %v2329_v56, %v3412_v30  ;;  %v1135_v57 = vrot.slane %v3581_v33, 7 }
 0x85b   :  { %v2477_v62 = vrot.slane %v2336_v58, %v3412_v30  ;;  %v3608_v5 = vsel %vm2191_vm10, %v2305_v31, %v2473_v59  ;;  %v1136_v31 = vrot.slane %v3583_v35, 7 }
 0x85d   :  { %v3611_v8 = vsel %vm2191_vm10, %v2312_v60, %v2477_v62 }
 0x8c7   :  { %v929_v17 = vpop.permute.xlu1 %928 }
 0x8c9   :  { %v934_v18 = vpop.permute.xlu0 %933 }
 0x8ca   :  { %v936_v0 = vsel %vm301_vm6, %v929_v17, %v934_v18 }
 0x8cb   :  { %v1039_v61 = vpop.permute.xlu1 %1038  ;;  %v938_v20 = vrot.slane %v936_v0, 2 }
 0x8cc   :  { %2875 = vmatmul.mubr.msk.f32.vlgmr.msra.gmra.mxu0 %vm301_vm6, %v1039_v61 }
 0x8cd   :  { %2878 = vmatpush3.msra.mxu0 %v3437_v2  ;;  %2893 = vmatprep.mubr.msk.f32.mxu0 %vm3281_vm0, %v3280_v1 }
 0x8ce   :  { %2864 = vmatmul.mubr.msk.f32.vlgmr.msra.gmra.mxu1 %vm444_vm7, %v938_v20  ;;  %2879 = vmatprep.subr.mxu0 %v3280_v1 }
 0x8cf   :  { %2880 = vmatpush3.msra.mxu0 %v3439_v3  ;;  %2897 = vmatpush3.msra.mxu1 %v3374_v11 }
 0x8d0   :  { %2881 = vmatprep.subr.mxu0 %v3280_v1  ;;  %2898 = vmatprep.subr.mxu1 %v3280_v1 }
 0x8d1   :  { %2882 = vmatpush3.msra.mxu0 %v3443_v4  ;;  %2899 = vmatpush3.msra.mxu1 %v3378_v12 }
 0x8d2   :  { %2883 = vmatprep.subr.mxu0 %v3280_v1  ;;  %2900 = vmatprep.subr.mxu1 %v3280_v1 }
 0x8d3   :  { %2884 = vmatpush3.msra.mxu0 %v3447_v6  ;;  %2901 = vmatpush3.msra.mxu1 %v3384_v13 }
 0x8d4   :  { %2885 = vmatprep.subr.mxu0 %v3280_v1  ;;  %2902 = vmatprep.subr.mxu1 %v3280_v1 }
 0x8d5   :  { %2886 = vmatpush3.msra.mxu0 %v3452_v7  ;;  %2903 = vmatpush3.msra.mxu1 %v3388_v14 }
 0x8d6   :  { %2887 = vmatprep.subr.mxu0 %v3280_v1  ;;  %2904 = vmatprep.mubr.msk.f32.mxu1 %vm3281_vm0, %v3280_v1 }
 0x8d7   :  { %2888 = vmatpush3.msra.mxu0 %v3457_v9  ;;  %2907 = vmatprep.subr.mxu1 %v3280_v1 }
 0x8d8   :  { %2889 = vmatprep.subr.mxu0 %v3280_v1 }
 0x8d9   :  { %2890 = vmatpush3.msra.mxu0 %v3461_v10 }
 0x8da   :  { %2891 = vmatprep.subr.mxu0 %v3280_v1 }
 0x8db   :  { %2892 = vmatpush3.msra.mxu0 %v3467_v15 }
 0x8dc   :  { %2926 = vmatprep.subr.mxu0 %v3280_v1 }
 0x98c   :  { %v1108_v21 = vpop.f32.mrf.mxu0 }
 0x98d   :  { %v1113_v22 = vrot.slane %v1108_v21, 5  ;;  %v1114_v23 = vrot.slane %v1108_v21, 6 }
 0x98e   :  { %v1007_v24 = vpop.f32.mrf.mxu1  ;;  %v2876_v25 = vpop.f32.mrf.mxu0 }
 0x98f   :  { %v1117_v26 = vadd.f32 %v1113_v22, %v3421_v40  ;;  %v1118_v28 = vadd.f32 %v1114_v23, %v3423_v42  ;;  %v1008_v34 = vadd.f32 %v3509_v32, %v1007_v24 }
 0x990   :  { %v2865_v29 = vpop.f32.mrf.mxu1 }
 0x991   :  { %3091 = vtanh.f32 %v1117_v26  ;;  %v2623_v16 = vmul.f32 -1.442695, %v1117_v26  ;;  %v2624_v39 = vmul.f32 -1.442695, %v1118_v28  ;;  %v2621_v41 = vmul.f32 -1.442695, %v1008_v34 }
 0x992   :  { %3093 = vtanh.f32 %v1118_v28 }
 0x993   :  { %3095 = vtanh.f32 %v1008_v34 }
 0x994   :  { %3097 = vpow2.f32 %v2623_v16 }
 0x995   :  { %3099 = vpow2.f32 %v2624_v39 }
 0x996   :  { %3101 = vpow2.f32 %v2621_v41 }
 0x99e   :  { %v3092_v36 = vpop.eup %3091 }
 0x99f   :  { %v3094_v37 = vpop.eup %3093  ;;  %1143 = vrot.lane.b32.xlu0 %v3092_v36, %s3284_s13 }
 0x9a0   :  { %1145 = vrot.lane.b32.xlu1 %v3094_v37, %s3284_s13  ;;  %v3096_v63 = vpop.eup %3095 }
 0x9a1   :  { %v3098_v43 = vpop.eup %3097 }
 0x9a2   :  { %v3100_v44 = vpop.eup %3099  ;;  %v1125_v45 = vadd.f32 1.0, %v3098_v43 }
 0x9a3   :  { %1020 = vrot.lane.b32.xlu0 %v3096_v63, %s3284_s13  ;;  %v1126_v19 = vadd.f32 1.0, %v3100_v44  ;;  %v3102_v46 = vpop.eup %3101 }
 0x9a4   :  { %3103 = vrcp.f32 %v1125_v45  ;;  %v1014_v47 = vadd.f32 1.0, %v3102_v46 }
 0x9a5   :  { %3105 = vrcp.f32 %v1126_v19 }
 0x9a6   :  { %3107 = vrcp.f32 %v1014_v47 }
 0x9b1   :  { %v3104_v48 = vpop.eup %3103 }
 0x9b2   :  { %v3106_v50 = vpop.eup %3105  ;;  %v1139_v58 = vmul.f32 %v3104_v48, %v1135_v57 }
 0x9b3   :  { %v3108_v54 = vpop.eup %3107  ;;  %v1140_v59 = vmul.f32 %v3106_v50, %v1136_v31 }
 0x9b4   :  { %v1018_v0 = vmul.f32 %v3108_v54, %v3588_v38 }
 0xa11   :  { %v1144_v49 = vpop.permute.xlu0 %1143 }
 0xa12   :  { %v1146_v51 = vpop.permute.xlu1 %1145  ;;  %v1149_v52 = vmul.f32 %v3104_v48, %v1144_v49 }
 0xa13   :  { %v1150_v53 = vmul.f32 %v3106_v50, %v1146_v51 }
 0xa14   :  { %1153 = vrot.lane.b32.xlu1 %v1149_v52, %s3285_s5 }
 0xa15   :  { %1155 = vrot.lane.b32.xlu0 %v1150_v53, %s3285_s5  ;;  %v1021_v55 = vpop.permute.xlu0 %1020 }
 0xa16   :  { %v1023_v56 = vmul.f32 %v3108_v54, %v1021_v55 }
 0xa18   :  { %1025 = vrot.lane.b32.xlu1 %v1023_v56, %s3285_s5 }
 0xa86   :  { %v1154_v60 = vpop.permute.xlu1 %1153 }
 0xa87   :  { %v1156_v62 = vpop.permute.xlu0 %1155  ;;  %v3655_v17 = vadd.f32 %v1154_v60, %v1139_v58 }
 0xa88   :  { %v3657_v18 = vadd.f32 %v1156_v62, %v1140_v59 }
 0xa89   :  { %3109 = vtanh.f32 %v3655_v17 }
 0xa8a   :  { %3111 = vtanh.f32 %v3657_v18  ;;  %v1026_v61 = vpop.permute.xlu1 %1025 }
 0xa8b   :  { %v3662_v20 = vadd.f32 %v1026_v61, %v1018_v0 }
 0xa8d   :  { %3113 = vtanh.f32 %v3662_v20 }
 0xa96   :  { %v3110_v33 = vpop.eup %3109 }
 0xa97   :  { %v3112_v35 = vpop.eup %3111  ;;  %1165 = vrot.lane.b32.xlu0 %v3110_v33, %s3284_s13 }
 0xa98   :  { %1167 = vrot.lane.b32.xlu1 %v3112_v35, %s3284_s13 }
 0xa9a   :  { %v3114_v21 = vpop.eup %3113 }
 0xa9b   :  { %1031 = vrot.lane.b32.xlu0 %v3114_v21, %s3284_s13 }
 0xb09   :  { %v1166_v22 = vpop.permute.xlu0 %1165 }
 0xb0a   :  { %v1168_v23 = vpop.permute.xlu1 %1167  ;;  %v1171_v25 = vmul.f32 %v3104_v48, %v1166_v22  ;;  %v1385_v22 = vrot.slane %v3655_v17, 7 }
 0xb0b   :  { %v1172_v24 = vmul.f32 %v3106_v50, %v1168_v23  ;;  %v1386_v23 = vrot.slane %v3657_v18, 7 }
 0xb0c   :  { %v1285_v29 = vrot.slane %v1171_v25, 3 }
 0xb0d   :  { %v1175_v38 = vrot.slane %v1172_v24, 7  ;;  %v1032_v26 = vpop.permute.xlu0 %1031  ;;  %v1286_v28 = vrot.slane %v1172_v24, 2 }
 0xb0e   :  { %v1034_v34 = vmul.f32 %v3108_v54, %v1032_v26 }
 0xb0f   :  { %v1177_v36 = vsel %vm1176_vm11, %v1175_v38, %v1171_v25  ;;  %v1287_v41 = vsel %vm432_vm5, %v1286_v28, %v1285_v29 }
 0xb10   :  { %1178 = vrot.lane.b32.xlu1 %v1177_v36, %s3285_s5  ;;  %v1182_v37 = vrot.slane %v1034_v34, 5  ;;  %v2343_v63 = vrot.slane %v1034_v34, %v3409_v27 }
 0xb12   :  { %v2344_v16 = vcombine.high %v2343_v63, %v2343_v63  ;;  %v2351_v39 = vrot.slane %v2343_v63, %v3409_v27  ;;  %1183 = vrot.lane.b32.xlu0 %v1182_v37, %s3284_s13 }
 0xb14   :  { %1288 = vrot.lane.b32.xlu1 %v1287_v41, %s3285_s5  ;;  %v2358_v43 = vrot.slane %v2344_v16, %v3409_v27  ;;  %v2483_v44 = vrot.slane %v2351_v39, %v3412_v30 }
 0xb16   :  { %v2487_v45 = vrot.slane %v2358_v43, %v3412_v30  ;;  %v3678_v19 = vsel %vm2542_vm12, %v3608_v5, %v2483_v44 }
 0xb18   :  { %v3681_v46 = vsel %vm2542_vm12, %v3611_v8, %v2487_v45 }
 0xb82   :  { %v1179_v47 = vpop.permute.xlu1 %1178 }
 0xb84   :  { %v1184_v48 = vpop.permute.xlu0 %1183 }
 0xb85   :  { %v1186_v49 = vsel %vm301_vm6, %v1179_v47, %v1184_v48 }
 0xb86   :  { %v1289_v50 = vpop.permute.xlu1 %1288  ;;  %v1188_v51 = vrot.slane %v1186_v49, 3 }
 0xb87   :  { %2905 = vmatmul.mubr.msk.f32.vlgmr.msra.gmra.mxu1 %vm301_vm6, %v1289_v50 }
 0xb88   :  { %2908 = vmatpush3.msra.mxu1 %v3437_v2  ;;  %2923 = vmatprep.mubr.msk.f32.mxu1 %vm3281_vm0, %v3280_v1 }
 0xb89   :  { %2894 = vmatmul.mubr.msk.f32.vlgmr.msra.gmra.mxu0 %vm444_vm7, %v1188_v51  ;;  %2909 = vmatprep.subr.mxu1 %v3280_v1 }
 0xb8a   :  { %2910 = vmatpush3.msra.mxu1 %v3439_v3  ;;  %2927 = vmatpush3.msra.mxu0 %v3374_v11 }
 0xb8b   :  { %2911 = vmatprep.subr.mxu1 %v3280_v1  ;;  %2928 = vmatprep.subr.mxu0 %v3280_v1 }
 0xb8c   :  { %2912 = vmatpush3.msra.mxu1 %v3443_v4  ;;  %2929 = vmatpush3.msra.mxu0 %v3378_v12 }
 0xb8d   :  { %2913 = vmatprep.subr.mxu1 %v3280_v1  ;;  %2930 = vmatprep.subr.mxu0 %v3280_v1 }
 0xb8e   :  { %2914 = vmatpush3.msra.mxu1 %v3447_v6  ;;  %2931 = vmatpush3.msra.mxu0 %v3384_v13 }
 0xb8f   :  { %2915 = vmatprep.subr.mxu1 %v3280_v1  ;;  %2932 = vmatprep.subr.mxu0 %v3280_v1 }
 0xb90   :  { %2916 = vmatpush3.msra.mxu1 %v3452_v7  ;;  %2933 = vmatpush3.msra.mxu0 %v3388_v14 }
 0xb91   :  { %2917 = vmatprep.subr.mxu1 %v3280_v1  ;;  %2934 = vmatprep.mubr.msk.f32.mxu0 %vm3281_vm0, %v3280_v1 }
 0xb92   :  { %2918 = vmatpush3.msra.mxu1 %v3457_v9  ;;  %2937 = vmatprep.subr.mxu0 %v3280_v1 }
 0xb93   :  { %2919 = vmatprep.subr.mxu1 %v3280_v1 }
 0xb94   :  { %2920 = vmatpush3.msra.mxu1 %v3461_v10 }
 0xb95   :  { %2921 = vmatprep.subr.mxu1 %v3280_v1 }
 0xb96   :  { %2922 = vmatpush3.msra.mxu1 %v3467_v15 }
 0xb97   :  { %2956 = vmatprep.subr.mxu1 %v3280_v1 }
 0xc47   :  { %v1358_v11 = vpop.f32.mrf.mxu1 }
 0xc48   :  { %v1363_v12 = vrot.slane %v1358_v11, 4  ;;  %v1364_v13 = vrot.slane %v1358_v11, 5 }
 0xc49   :  { %v1257_v14 = vpop.f32.mrf.mxu0  ;;  %v2906_v2 = vpop.f32.mrf.mxu1 }
 0xc4a   :  { %v1367_v3 = vadd.f32 %v1363_v12, %v3421_v40  ;;  %v1368_v4 = vadd.f32 %v1364_v13, %v3423_v42  ;;  %v1258_v7 = vadd.f32 %v3509_v32, %v1257_v14 }
 0xc4b   :  { %v2895_v6 = vpop.f32.mrf.mxu0 }
 0xc4c   :  { %3115 = vtanh.f32 %v1367_v3  ;;  %v2628_v5 = vmul.f32 -1.442695, %v1367_v3  ;;  %v2629_v8 = vmul.f32 -1.442695, %v1368_v4  ;;  %v2626_v52 = vmul.f32 -1.442695, %v1258_v7 }
 0xc4d   :  { %3117 = vtanh.f32 %v1368_v4 }
 0xc4e   :  { %3119 = vtanh.f32 %v1258_v7 }
 0xc4f   :  { %3121 = vpow2.f32 %v2628_v5 }
 0xc50   :  { %3123 = vpow2.f32 %v2629_v8  ;;  %v3755_v8 = vld [vmem:[#allocation5 + $0x38] sm:$0xff] }
 0xc51   :  { %3125 = vpow2.f32 %v2626_v52  ;;  %v3770_v52 = vld [vmem:[#allocation5 + $0x28] sm:$0xff] }
 0xc59   :  { %v3116_v9 = vpop.eup %3115 }
 0xc5a   :  { %v3118_v10 = vpop.eup %3117  ;;  %1393 = vrot.lane.b32.xlu0 %v3116_v9, %s3284_s13 }
 0xc5b   :  { %1395 = vrot.lane.b32.xlu1 %v3118_v10, %s3284_s13  ;;  %v3120_v15 = vpop.eup %3119 }
 0xc5c   :  { %v3122_v53 = vpop.eup %3121 }
 0xc5d   :  { %v3124_v54 = vpop.eup %3123  ;;  %v1375_v55 = vadd.f32 1.0, %v3122_v53  ;;  %v3773_v53 = vld [vmem:[#allocation3 + $0x10] sm:$0xff] }
 0xc5e   :  { %1270 = vrot.lane.b32.xlu0 %v3120_v15, %s3284_s13  ;;  %v1376_v56 = vadd.f32 1.0, %v3124_v54  ;;  %v3126_v57 = vpop.eup %3125  ;;  %v3778_v54 = vld [vmem:[#allocation5 + $0x20] sm:$0xff] }
 0xc5f   :  { %3127 = vrcp.f32 %v1375_v55  ;;  %v1264_v31 = vadd.f32 1.0, %v3126_v57  ;;  %v3781_v55 = vld [vmem:[#allocation3 + $0x8] sm:$0xff]  ;;  %v3789_v57 = vld [vmem:[#allocation3] sm:$0xff] }
 0xc60   :  { %3129 = vrcp.f32 %v1376_v56  ;;  %v3786_v56 = vld [vmem:[#allocation5 + $0x18] sm:$0xff] }
 0xc61   :  { %3131 = vrcp.f32 %v1264_v31  ;;  %v3795_v31 = vld [vmem:[#allocation5 + $0x10] sm:$0xff] }
 0xc6c   :  { %v3128_v58 = vpop.eup %3127 }
 0xc6d   :  { %v3130_v60 = vpop.eup %3129  ;;  %v1389_v24 = vmul.f32 %v3128_v58, %v1385_v22 }
 0xc6e   :  { %v3132_v33 = vpop.eup %3131  ;;  %v1390_v38 = vmul.f32 %v3130_v60, %v1386_v23 }
 0xc6f   :  { %v1268_v34 = vmul.f32 %v3132_v33, %v3662_v20 }
 0xccc   :  { %v1394_v59 = vpop.permute.xlu0 %1393 }
 0xccd   :  { %v1396_v62 = vpop.permute.xlu1 %1395  ;;  %v1399_v0 = vmul.f32 %v3128_v58, %v1394_v59  ;;  %v3804_v59 = vld [vmem:[#allocation5] sm:$0xff] }
 0xcce   :  { %v1400_v61 = vmul.f32 %v3130_v60, %v1396_v62 }
 0xccf   :  { %1403 = vrot.lane.b32.xlu1 %v1399_v0, %s3285_s5 }
 0xcd0   :  { %1405 = vrot.lane.b32.xlu0 %v1400_v61, %s3285_s5  ;;  %v1271_v35 = vpop.permute.xlu0 %1270 }
 0xcd1   :  { %v1273_v21 = vmul.f32 %v3132_v33, %v1271_v35 }
 0xcd3   :  { %1275 = vrot.lane.b32.xlu1 %v1273_v21, %s3285_s5 }
 0xd41   :  { %v1404_v25 = vpop.permute.xlu1 %1403 }
 0xd42   :  { %v3725_v26 = vadd.f32 %v1404_v25, %v1389_v24  ;;  %v1406_v28 = vpop.permute.xlu0 %1405 }
 0xd43   :  { %v3727_v29 = vadd.f32 %v1406_v28, %v1390_v38 }
 0xd44   :  { %3133 = vtanh.f32 %v3725_v26 }
 0xd45   :  { %3135 = vtanh.f32 %v3727_v29  ;;  %v1276_v36 = vpop.permute.xlu1 %1275 }
 0xd46   :  { %v3732_v37 = vadd.f32 %v1276_v36, %v1268_v34 }
 0xd48   :  { %3137 = vtanh.f32 %v3732_v37 }
 0xd51   :  { %v3134_v17 = vpop.eup %3133 }
 0xd52   :  { %v3136_v18 = vpop.eup %3135  ;;  %1415 = vrot.lane.b32.xlu0 %v3134_v17, %s3284_s13 }
 0xd53   :  { %1417 = vrot.lane.b32.xlu1 %v3136_v18, %s3284_s13 }
 0xd55   :  { %v3138_v63 = vpop.eup %3137 }
 0xd56   :  { %1281 = vrot.lane.b32.xlu0 %v3138_v63, %s3284_s13 }
 0xdc4   :  { %v1416_v16 = vpop.permute.xlu0 %1415 }
 0xdc5   :  { %v1418_v39 = vpop.permute.xlu1 %1417  ;;  %v1421_v41 = vmul.f32 %v3128_v58, %v1416_v16  ;;  %v3800_v58 = vld [vmem:[#allocation5 + $0x8] sm:$0xff] }
 0xdc6   :  { %v1422_v43 = vmul.f32 %v3130_v60, %v1418_v39 }
 0xdc7   :  { %v1535_v45 = vrot.slane %v1421_v41, 4 }
 0xdc8   :  { %v1425_v20 = vrot.slane %v1422_v43, 7  ;;  %v1282_v44 = vpop.permute.xlu0 %1281  ;;  %v1536_v47 = vrot.slane %v1422_v43, 3 }
 0xdc9   :  { %v1284_v48 = vmul.f32 %v3132_v33, %v1282_v44 }
 0xdca   :  { %v1427_v49 = vsel %vm1426_vm13, %v1425_v20, %v1421_v41  ;;  %v1537_v13 = vsel %vm432_vm5, %v1536_v47, %v1535_v45 }
 0xdcb   :  { %1428 = vrot.lane.b32.xlu1 %v1427_v49, %s3285_s5  ;;  %v1432_v50 = vrot.slane %v1284_v48, 4  ;;  %v2365_v51 = vrot.slane %v1284_v48, %v3409_v27 }
 0xdcd   :  { %v2366_v11 = vcombine.high %v2365_v51, %v2365_v51  ;;  %v2373_v12 = vrot.slane %v2365_v51, %v3409_v27  ;;  %1433 = vrot.lane.b32.xlu0 %v1432_v50, %s3284_s13  ;;  %v1635_v51 = vrot.slane %v3725_v26, 7 }
 0xdcf   :  { %1538 = vrot.lane.b32.xlu1 %v1537_v13, %s3285_s5  ;;  %v2380_v14 = vrot.slane %v2366_v11, %v3409_v27  ;;  %v2493_v2 = vrot.slane %v2373_v12, %v3412_v30  ;;  %v1636_v11 = vrot.slane %v3727_v29, 7 }
 0xdd1   :  { %v2497_v3 = vrot.slane %v2380_v14, %v3412_v30  ;;  %v3748_v4 = vsel %vm2545_vm14, %v3678_v19, %v2493_v2  ;;  %v3762_v19 = vld [vmem:[#allocation5 + $0x30] sm:$0xff] }
 0xdd3   :  { %v3751_v6 = vsel %vm2545_vm14, %v3681_v46, %v2497_v3  ;;  %v3765_v46 = vld [vmem:[#allocation3 + $0x18] sm:$0xff] }
 0xe3d   :  { %v1429_v7 = vpop.permute.xlu1 %1428 }
 0xe3f   :  { %v1434_v9 = vpop.permute.xlu0 %1433 }
 0xe40   :  { %v1436_v10 = vsel %vm301_vm6, %v1429_v7, %v1434_v9 }
 0xe41   :  { %v1539_v15 = vpop.permute.xlu1 %1538  ;;  %v1438_v5 = vrot.slane %v1436_v10, 4 }
 0xe42   :  { %2935 = vmatmul.mubr.msk.f32.vlgmr.msra.gmra.mxu0 %vm301_vm6, %v1539_v15 }
 0xe43   :  { %2938 = vmatpush3.msra.mxu0 %v3755_v8  ;;  %2953 = vmatprep.mubr.msk.f32.mxu0 %vm3281_vm0, %v3280_v1 }
 0xe44   :  { %2924 = vmatmul.mubr.msk.f32.vlgmr.msra.gmra.mxu1 %vm444_vm7, %v1438_v5  ;;  %2939 = vmatprep.subr.mxu0 %v3280_v1 }
 0xe45   :  { %2940 = vmatpush3.msra.mxu0 %v3762_v19  ;;  %2957 = vmatpush3.msra.mxu1 %v3765_v46 }
 0xe46   :  { %2941 = vmatprep.subr.mxu0 %v3280_v1  ;;  %2958 = vmatprep.subr.mxu1 %v3280_v1 }
 0xe47   :  { %2942 = vmatpush3.msra.mxu0 %v3770_v52  ;;  %2959 = vmatpush3.msra.mxu1 %v3773_v53 }
 0xe48   :  { %2943 = vmatprep.subr.mxu0 %v3280_v1  ;;  %2960 = vmatprep.subr.mxu1 %v3280_v1 }
 0xe49   :  { %2944 = vmatpush3.msra.mxu0 %v3778_v54  ;;  %2961 = vmatpush3.msra.mxu1 %v3781_v55 }
 0xe4a   :  { %2945 = vmatprep.subr.mxu0 %v3280_v1  ;;  %2962 = vmatprep.subr.mxu1 %v3280_v1 }
 0xe4b   :  { %2946 = vmatpush3.msra.mxu0 %v3786_v56  ;;  %2963 = vmatpush3.msra.mxu1 %v3789_v57 }
 0xe4c   :  { %2947 = vmatprep.subr.mxu0 %v3280_v1  ;;  %2964 = vmatprep.mubr.msk.f32.mxu1 %vm3281_vm0, %v3280_v1 }
 0xe4d   :  { %2948 = vmatpush3.msra.mxu0 %v3795_v31  ;;  %2967 = vmatprep.subr.mxu1 %v3280_v1 }
 0xe4e   :  { %2949 = vmatprep.subr.mxu0 %v3280_v1 }
 0xe4f   :  { %2950 = vmatpush3.msra.mxu0 %v3800_v58 }
 0xe50   :  { %2951 = vmatprep.subr.mxu0 %v3280_v1 }
 0xe51   :  { %2952 = vmatpush3.msra.mxu0 %v3804_v59 }
 0xe52   :  { %2986 = vmatprep.subr.mxu0 %v3280_v1 }
 0xf02   :  { %v1608_v60 = vpop.f32.mrf.mxu0 }
 0xf03   :  { %v1613_v62 = vrot.slane %v1608_v60, 3  ;;  %v1614_v0 = vrot.slane %v1608_v60, 4 }
 0xf04   :  { %v1507_v61 = vpop.f32.mrf.mxu1  ;;  %v2936_v33 = vpop.f32.mrf.mxu0 }
 0xf05   :  { %v1617_v35 = vadd.f32 %v1613_v62, %v3421_v40  ;;  %v1618_v21 = vadd.f32 %v1614_v0, %v3423_v42  ;;  %v1508_v23 = vadd.f32 %v3509_v32, %v1507_v61 }
 0xf06   :  { %v2925_v22 = vpop.f32.mrf.mxu1 }
 0xf07   :  { %3139 = vtanh.f32 %v1617_v35  ;;  %v2633_v28 = vmul.f32 -1.442695, %v1617_v35  ;;  %v2634_v34 = vmul.f32 -1.442695, %v1618_v21  ;;  %v2631_v36 = vmul.f32 -1.442695, %v1508_v23 }
 0xf08   :  { %3141 = vtanh.f32 %v1618_v21 }
 0xf09   :  { %3143 = vtanh.f32 %v1508_v23 }
 0xf0a   :  { %3145 = vpow2.f32 %v2633_v28 }
 0xf0b   :  { %3147 = vpow2.f32 %v2634_v34 }
 0xf0c   :  { %3149 = vpow2.f32 %v2631_v36 }
 0xf14   :  { %v3140_v24 = vpop.eup %3139 }
 0xf15   :  { %v3142_v25 = vpop.eup %3141  ;;  %1643 = vrot.lane.b32.xlu0 %v3140_v24, %s3284_s13 }
 0xf16   :  { %1645 = vrot.lane.b32.xlu1 %v3142_v25, %s3284_s13  ;;  %v3144_v38 = vpop.eup %3143 }
 0xf17   :  { %v3146_v17 = vpop.eup %3145 }
 0xf18   :  { %v3148_v18 = vpop.eup %3147  ;;  %v1625_v63 = vadd.f32 1.0, %v3146_v17 }
 0xf19   :  { %1520 = vrot.lane.b32.xlu0 %v3144_v38, %s3284_s13  ;;  %v1626_v32 = vadd.f32 1.0, %v3148_v18  ;;  %v3150_v16 = vpop.eup %3149 }
 0xf1a   :  { %3151 = vrcp.f32 %v1625_v63  ;;  %v1514_v39 = vadd.f32 1.0, %v3150_v16 }
 0xf1b   :  { %3153 = vrcp.f32 %v1626_v32 }
 0xf1c   :  { %3155 = vrcp.f32 %v1514_v39 }
 0xf27   :  { %v3152_v41 = vpop.eup %3151 }
 0xf28   :  { %v3154_v20 = vpop.eup %3153  ;;  %v1639_v12 = vmul.f32 %v3152_v41, %v1635_v51 }
 0xf29   :  { %v3156_v48 = vpop.eup %3155  ;;  %v1640_v13 = vmul.f32 %v3154_v20, %v1636_v11 }
 0xf2a   :  { %v1518_v9 = vmul.f32 %v3156_v48, %v3732_v37 }
 0xf87   :  { %v1644_v43 = vpop.permute.xlu0 %1643 }
 0xf88   :  { %v1646_v44 = vpop.permute.xlu1 %1645  ;;  %v1649_v45 = vmul.f32 %v3152_v41, %v1644_v43 }
 0xf89   :  { %v1650_v47 = vmul.f32 %v3154_v20, %v1646_v44 }
 0xf8a   :  { %1653 = vrot.lane.b32.xlu1 %v1649_v45, %s3285_s5 }
 0xf8b   :  { %1655 = vrot.lane.b32.xlu0 %v1650_v47, %s3285_s5  ;;  %v1521_v49 = vpop.permute.xlu0 %1520  ;;  %v3884_v47 = vld [vmem:[%s4007_s7] ss:$0 sm:$0xff] }
 0xf8c   :  { %v1523_v50 = vmul.f32 %v3156_v48, %v1521_v49 }
 0xf8e   :  { %1525 = vrot.lane.b32.xlu1 %v1523_v50, %s3285_s5 }
 0xffc   :  { %v1654_v14 = vpop.permute.xlu1 %1653 }
 0xffd   :  { %v1656_v2 = vpop.permute.xlu0 %1655  ;;  %v3819_v3 = vadd.f32 %v1654_v14, %v1639_v12 }
 0xffe   :  { %v3821_v7 = vadd.f32 %v1656_v2, %v1640_v13 }
 0xfff   :  { %3157 = vtanh.f32 %v3819_v3 }
0x1000   :  { %3159 = vtanh.f32 %v3821_v7  ;;  %v1526_v10 = vpop.permute.xlu1 %1525 }
0x1001   :  { %v3826_v15 = vadd.f32 %v1526_v10, %v1518_v9 }
0x1003   :  { %3161 = vtanh.f32 %v3826_v15 }
0x100c   :  { %v3158_v26 = vpop.eup %3157 }
0x100d   :  { %v3160_v29 = vpop.eup %3159  ;;  %1665 = vrot.lane.b32.xlu0 %v3158_v26, %s3284_s13 }
0x100e   :  { %1667 = vrot.lane.b32.xlu1 %v3160_v29, %s3284_s13 }
0x1010   :  { %v3162_v5 = vpop.eup %3161 }
0x1011   :  { %1531 = vrot.lane.b32.xlu0 %v3162_v5, %s3284_s13 }
0x107f   :  { %v1666_v60 = vpop.permute.xlu0 %1665 }
0x1080   :  { %v1668_v62 = vpop.permute.xlu1 %1667  ;;  %v1671_v61 = vmul.f32 %v3152_v41, %v1666_v60 }
0x1081   :  { %v1672_v0 = vmul.f32 %v3154_v20, %v1668_v62 }
0x1082   :  { %v1785_v21 = vrot.slane %v1671_v61, 5 }
0x1083   :  { %v1675_v37 = vrot.slane %v1672_v0, 7  ;;  %v1532_v33 = vpop.permute.xlu0 %1531  ;;  %v1786_v35 = vrot.slane %v1672_v0, 4 }
0x1084   :  { %v1534_v22 = vmul.f32 %v3156_v48, %v1532_v33 }
0x1085   :  { %v1677_v23 = vsel %vm1676_vm15, %v1675_v37, %v1671_v61  ;;  %v1787_v34 = vsel %vm432_vm5, %v1786_v35, %v1785_v21 }
0x1086   :  { %1678 = vrot.lane.b32.xlu1 %v1677_v23, %s3285_s5  ;;  %v1682_v24 = vrot.slane %v1534_v22, 3  ;;  %v2387_v25 = vrot.slane %v1534_v22, %v3409_v27  ;;  %v1886_v22 = vrot.slane %v3821_v7, 7 }
0x1088   :  { %v2388_v38 = vcombine.high %v2387_v25, %v2387_v25  ;;  %v2395_v28 = vrot.slane %v2387_v25, %v3409_v27  ;;  %1683 = vrot.lane.b32.xlu0 %v1682_v24, %s3284_s13  ;;  %v1885_v25 = vrot.slane %v3819_v3, 7 }
0x108a   :  { %1788 = vrot.lane.b32.xlu1 %v1787_v34, %s3285_s5  ;;  %v2402_v36 = vrot.slane %v2388_v38, %v3409_v27  ;;  %v2503_v17 = vrot.slane %v2395_v28, %v3412_v30 }
0x108c   :  { %v2507_v18 = vrot.slane %v2402_v36, %v3412_v30  ;;  %v3843_v63 = vsel %vm85_vm1, %v3748_v4, %v2503_v17 }
0x108e   :  { %v3847_v32 = vsel %vm85_vm1, %v3751_v6, %v2507_v18  ;;  %vm1926_vm1 = vcmask 1047559  }
0x10f8   :  { %v1679_v16 = vpop.permute.xlu1 %1678 }
0x10fa   :  { %v1684_v39 = vpop.permute.xlu0 %1683 }
0x10fb   :  { %v1686_v41 = vsel %vm301_vm6, %v1679_v16, %v1684_v39 }
0x10fc   :  { %v1789_v43 = vpop.permute.xlu1 %1788  ;;  %v1688_v20 = vrot.slane %v1686_v41, 5 }
0x10fd   :  { %2965 = vmatmul.mubr.msk.f32.vlgmr.msra.gmra.mxu1 %vm301_vm6, %v1789_v43 }
0x10fe   :  { %2968 = vmatpush3.msra.mxu1 %v3755_v8  ;;  %2983 = vmatprep.mubr.msk.f32.mxu1 %vm3281_vm0, %v3280_v1 }
0x10ff   :  { %2954 = vmatmul.mubr.msk.f32.vlgmr.msra.gmra.mxu0 %vm444_vm7, %v1688_v20  ;;  %2969 = vmatprep.subr.mxu1 %v3280_v1 }
0x1100   :  { %2970 = vmatpush3.msra.mxu1 %v3762_v19  ;;  %2987 = vmatpush3.msra.mxu0 %v3765_v46 }
0x1101   :  { %2971 = vmatprep.subr.mxu1 %v3280_v1  ;;  %2988 = vmatprep.subr.mxu0 %v3280_v1 }
0x1102   :  { %2972 = vmatpush3.msra.mxu1 %v3770_v52  ;;  %2989 = vmatpush3.msra.mxu0 %v3773_v53 }
0x1103   :  { %2973 = vmatprep.subr.mxu1 %v3280_v1  ;;  %2990 = vmatprep.subr.mxu0 %v3280_v1 }
0x1104   :  { %2974 = vmatpush3.msra.mxu1 %v3778_v54  ;;  %2991 = vmatpush3.msra.mxu0 %v3781_v55 }
0x1105   :  { %2975 = vmatprep.subr.mxu1 %v3280_v1  ;;  %2992 = vmatprep.subr.mxu0 %v3280_v1 }
0x1106   :  { %2976 = vmatpush3.msra.mxu1 %v3786_v56  ;;  %2993 = vmatpush3.msra.mxu0 %v3789_v57 }
0x1107   :  { %2977 = vmatprep.subr.mxu1 %v3280_v1  ;;  %2994 = vmatprep.mubr.msk.f32.mxu0 %vm3281_vm0, %v3280_v1 }
0x1108   :  { %2978 = vmatpush3.msra.mxu1 %v3795_v31  ;;  %2997 = vmatprep.subr.mxu0 %v3280_v1 }
0x1109   :  { %2979 = vmatprep.subr.mxu1 %v3280_v1 }
0x110a   :  { %2980 = vmatpush3.msra.mxu1 %v3800_v58 }
0x110b   :  { %2981 = vmatprep.subr.mxu1 %v3280_v1 }
0x110c   :  { %2982 = vmatpush3.msra.mxu1 %v3804_v59 }
0x11bd   :  { %v1858_v4 = vpop.f32.mrf.mxu1 }
0x11be   :  { %v1863_v6 = vrot.slane %v1858_v4, 2  ;;  %v1864_v46 = vrot.slane %v1858_v4, 3 }
0x11bf   :  { %v1757_v53 = vpop.f32.mrf.mxu0  ;;  %v2966_v55 = vpop.f32.mrf.mxu1 }
0x11c0   :  { %v1868_v57 = vadd.f32 %v1864_v46, %v3423_v42  ;;  %v1867_v45 = vadd.f32 %v1863_v6, %v3421_v40  ;;  %v1758_v48 = vadd.f32 %v3884_v47, %v1757_v53 }
0x11c1   :  { %v2955_v44 = vpop.f32.mrf.mxu0 }
0x11c2   :  { %3163 = vtanh.f32 %v1868_v57  ;;  %v2639_v11 = vmul.f32 -1.442695, %v1868_v57  ;;  %v2638_v12 = vmul.f32 -1.442695, %v1867_v45  ;;  %v2636_v13 = vmul.f32 -1.442695, %v1758_v48 }
0x11c3   :  { %3165 = vtanh.f32 %v1867_v45 }
0x11c4   :  { %3167 = vtanh.f32 %v1758_v48 }
0x11c5   :  { %3169 = vpow2.f32 %v2639_v11 }
0x11c6   :  { %3171 = vpow2.f32 %v2638_v12 }
0x11c7   :  { %3173 = vpow2.f32 %v2636_v13 }
0x11cf   :  { %v3164_v49 = vpop.eup %3163 }
0x11d0   :  { %1895 = vrot.lane.b32.xlu0 %v3164_v49, %s3284_s13  ;;  %v3166_v50 = vpop.eup %3165 }
0x11d1   :  { %v3168_v51 = vpop.eup %3167 }
0x11d2   :  { %1770 = vrot.lane.b32.xlu1 %v3168_v51, %s3284_s13  ;;  %v3170_v14 = vpop.eup %3169 }
0x11d3   :  { %v3172_v2 = vpop.eup %3171  ;;  %v1876_v9 = vadd.f32 1.0, %v3170_v14 }
0x11d4   :  { %1893 = vrot.lane.b32.xlu0 %v3166_v50, %s3284_s13  ;;  %v3174_v10 = vpop.eup %3173  ;;  %v1875_v26 = vadd.f32 1.0, %v3172_v2 }
0x11d5   :  { %3175 = vrcp.f32 %v1876_v9  ;;  %v1764_v29 = vadd.f32 1.0, %v3174_v10 }
0x11d6   :  { %3177 = vrcp.f32 %v1875_v26 }
0x11d7   :  { %3179 = vrcp.f32 %v1764_v29 }
0x11e2   :  { %v3176_v5 = vpop.eup %3175 }
0x11e3   :  { %v3178_v0 = vpop.eup %3177  ;;  %v1890_v23 = vmul.f32 %v3176_v5, %v1886_v22 }
0x11e4   :  { %v3180_v61 = vpop.eup %3179  ;;  %v1889_v34 = vmul.f32 %v3178_v0, %v1885_v25 }
0x11e5   :  { %v1768_v28 = vmul.f32 %v3180_v61, %v3826_v15 }
0x1242   :  { %v1896_v60 = vpop.permute.xlu0 %1895 }
0x1243   :  { %v1900_v62 = vmul.f32 %v3176_v5, %v1896_v60 }
0x1244   :  { %v1771_v37 = vpop.permute.xlu1 %1770 }
0x1245   :  { %1905 = vrot.lane.b32.xlu1 %v1900_v62, %s3285_s5  ;;  %v1773_v35 = vmul.f32 %v3180_v61, %v1771_v37 }
0x1246   :  { %v1894_v33 = vpop.permute.xlu0 %1893 }
0x1247   :  { %v1899_v21 = vmul.f32 %v3178_v0, %v1894_v33  ;;  %1775 = vrot.lane.b32.xlu0 %v1773_v35, %s3285_s5 }
0x1249   :  { %1903 = vrot.lane.b32.xlu1 %v1899_v21, %s3285_s5 }
0x12b7   :  { %v1906_v24 = vpop.permute.xlu1 %1905 }
0x12b8   :  { %v3895_v38 = vadd.f32 %v1906_v24, %v1890_v23 }
0x12b9   :  { %v1776_v36 = vpop.permute.xlu0 %1775 }
0x12ba   :  { %3181 = vtanh.f32 %v3895_v38  ;;  %v3899_v18 = vadd.f32 %v1776_v36, %v1768_v28 }
0x12bb   :  { %v1904_v17 = vpop.permute.xlu1 %1903 }
0x12bc   :  { %v3901_v16 = vadd.f32 %v1904_v17, %v1889_v34  ;;  %3183 = vtanh.f32 %v3899_v18 }
0x12be   :  { %3185 = vtanh.f32 %v3901_v16 }
0x12c7   :  { %v3182_v7 = vpop.eup %3181 }
0x12c8   :  { %1917 = vrot.lane.b32.xlu0 %v3182_v7, %s3284_s13 }
0x12c9   :  { %v3184_v3 = vpop.eup %3183 }
0x12ca   :  { %1781 = vrot.lane.b32.xlu1 %v3184_v3, %s3284_s13 }
0x12cb   :  { %v3186_v39 = vpop.eup %3185 }
0x12cc   :  { %1915 = vrot.lane.b32.xlu0 %v3186_v39, %s3284_s13  ;;  %v2136_v39 = vrot.slane %v3895_v38, 7 }
0x133a   :  { %v1918_v15 = vpop.permute.xlu0 %1917 }
0x133b   :  { %v1922_v41 = vmul.f32 %v3176_v5, %v1918_v15  ;;  %v2135_v15 = vrot.slane %v3901_v16, 7 }
0x133c   :  { %v1782_v43 = vpop.permute.xlu1 %1781 }
0x133d   :  { %v1784_v20 = vmul.f32 %v3180_v61, %v1782_v43  ;;  %v1925_v6 = vrot.slane %v1922_v41, 7  ;;  %v2036_v49 = vrot.slane %v1922_v41, 5 }
0x133e   :  { %v1916_v4 = vpop.permute.xlu0 %1915 }
0x133f   :  { %v1921_v46 = vmul.f32 %v3178_v0, %v1916_v4  ;;  %v1932_v53 = vrot.slane %v1784_v20, 2  ;;  %v2409_v55 = vrot.slane %v1784_v20, %v3409_v27 }
0x1341   :  { %v2035_v57 = vrot.slane %v1921_v46, 6  ;;  %v1927_v44 = vsel %vm1926_vm1, %v1925_v6, %v1921_v46  ;;  %v2410_v45 = vcombine.high %v2409_v55, %v2409_v55  ;;  %v2417_v48 = vrot.slane %v2409_v55, %v3409_v27  ;;  %1933 = vrot.lane.b32.xlu0 %v1932_v53, %s3284_s13 }
0x1342   :  { %1928 = vrot.lane.b32.xlu1 %v1927_v44, %s3285_s5 }
0x1343   :  { %v2424_v50 = vrot.slane %v2410_v45, %v3409_v27  ;;  %v2513_v51 = vrot.slane %v2417_v48, %v3412_v30  ;;  %v2037_v11 = vsel %vm432_vm5, %v2036_v49, %v2035_v57 }
0x1345   :  { %v2517_v12 = vrot.slane %v2424_v50, %v3412_v30  ;;  %v3918_v13 = vsel %vm2550_vm2, %v3843_v63, %v2513_v51 }
0x1346   :  { %2038 = vrot.lane.b32.xlu1 %v2037_v11, %s3285_s5 }
0x1347   :  { %v3921_v14 = vsel %vm2550_vm2, %v3847_v32, %v2517_v12 }
0x13b3   :  { %v1934_v2 = vpop.permute.xlu0 %1933 }
0x13b4   :  { %v1929_v9 = vpop.permute.xlu1 %1928 }
0x13b5   :  { %v1936_v10 = vsel %vm301_vm6, %v1929_v9, %v1934_v2 }
0x13b6   :  { %v1938_v26 = vrot.slane %v1936_v10, 6 }
0x13b8   :  { %2984 = vmatmul.mubr.msk.f32.vlgmr.msra.gmra.mxu1 %vm444_vm7, %v1938_v26  ;;  %v2039_v29 = vpop.permute.xlu1 %2038 }
0x13b9   :  { %2995 = vmatmul.mubr.msk.f32.vlgmr.msra.gmra.mxu0 %vm301_vm6, %v2039_v29 }
0x13ba   :  { %2998 = vmatpush3.msra.mxu0 %v3755_v8  ;;  %3013 = vmatprep.mubr.msk.f32.mxu0 %vm3281_vm0, %v3280_v1  ;;  %vm2553_vm0 = vcmask 1045504  }
0x13bb   :  { %2999 = vmatprep.subr.mxu0 %v3280_v1 }
0x13bc   :  { %3000 = vmatpush3.msra.mxu0 %v3762_v19 }
0x13bd   :  { %3001 = vmatprep.subr.mxu0 %v3280_v1 }
0x13be   :  { %3002 = vmatpush3.msra.mxu0 %v3770_v52 }
0x13bf   :  { %3003 = vmatprep.subr.mxu0 %v3280_v1 }
0x13c0   :  { %3004 = vmatpush3.msra.mxu0 %v3778_v54 }
0x13c1   :  { %3005 = vmatprep.subr.mxu0 %v3280_v1 }
0x13c2   :  { %3006 = vmatpush3.msra.mxu0 %v3786_v56 }
0x13c3   :  { %3007 = vmatprep.subr.mxu0 %v3280_v1 }
0x13c4   :  { %3008 = vmatpush3.msra.mxu0 %v3795_v31 }
0x13c5   :  { %3009 = vmatprep.subr.mxu0 %v3280_v1 }
0x13c6   :  { %3010 = vmatpush3.msra.mxu0 %v3800_v58 }
0x13c7   :  { %3011 = vmatprep.subr.mxu0 %v3280_v1 }
0x13c8   :  { %3012 = vmatpush3.msra.mxu0 %v3804_v59 }
0x1478   :  { %v2007_v8 = vpop.f32.mrf.mxu1 }
0x1479   :  { %v2008_v19 = vadd.f32 %v3884_v47, %v2007_v8  ;;  %v2108_v52 = vpop.f32.mrf.mxu0 }
0x147a   :  { %v2113_v54 = vrot.slane %v2108_v52, 1  ;;  %v2114_v63 = vrot.slane %v2108_v52, 2  ;;  %v2985_v32 = vpop.f32.mrf.mxu1 }
0x147b   :  { %3187 = vtanh.f32 %v2008_v19  ;;  %v2996_v56 = vpop.f32.mrf.mxu0  ;;  %v2641_v60 = vmul.f32 -1.442695, %v2008_v19 }
0x147c   :  { %v2117_v5 = vadd.f32 %v2113_v54, %v3421_v40  ;;  %v2118_v31 = vadd.f32 %v2114_v63, %v3423_v42 }
0x147e   :  { %3189 = vtanh.f32 %v2117_v5  ;;  %v2643_v62 = vmul.f32 -1.442695, %v2117_v5  ;;  %v2644_v0 = vmul.f32 -1.442695, %v2118_v31 }
0x147f   :  { %3191 = vtanh.f32 %v2118_v31 }
0x1480   :  { %3193 = vpow2.f32 %v2641_v60 }
0x1481   :  { %3195 = vpow2.f32 %v2643_v62 }
0x1482   :  { %3197 = vpow2.f32 %v2644_v0 }
0x1488   :  { %v3188_v58 = vpop.eup %3187 }
0x1489   :  { %2020 = vrot.lane.b32.xlu0 %v3188_v58, %s3284_s13 }
0x148b   :  { %v3190_v1 = vpop.eup %3189 }
0x148c   :  { %v3192_v59 = vpop.eup %3191 }
0x148d   :  { %2145 = vrot.lane.b32.xlu1 %v3192_v59, %s3284_s13  ;;  %2143 = vrot.lane.b32.xlu0 %v3190_v1, %s3284_s13  ;;  %v3194_v40 = vpop.eup %3193 }
0x148e   :  { %v3196_v61 = vpop.eup %3195  ;;  %v2014_v42 = vadd.f32 1.0, %v3194_v40 }
0x148f   :  { %v3198_v37 = vpop.eup %3197  ;;  %v2125_v33 = vadd.f32 1.0, %v3196_v61 }
0x1490   :  { %3199 = vrcp.f32 %v2014_v42  ;;  %v2126_v35 = vadd.f32 1.0, %v3198_v37  ;;  %v2647_v42 = vld [vmem:[%s4008_s8] ss:$0 sm:$0xff] }
0x1491   :  { %3201 = vrcp.f32 %v2125_v33 }
0x1492   :  { %3203 = vrcp.f32 %v2126_v35 }
0x149d   :  { %v3200_v21 = vpop.eup %3199 }
0x149e   :  { %v3202_v24 = vpop.eup %3201  ;;  %v2018_v7 = vmul.f32 %v3200_v21, %v3899_v18 }
0x149f   :  { %v3204_v25 = vpop.eup %3203  ;;  %v2139_v20 = vmul.f32 %v3202_v24, %v2135_v15 }
0x14a0   :  { %v2140_v43 = vmul.f32 %v3204_v25, %v2136_v39 }
0x14fb   :  { %v2021_v22 = vpop.permute.xlu0 %2020 }
0x14fc   :  { %v2023_v23 = vmul.f32 %v3200_v21, %v2021_v22 }
0x14fe   :  { %2025 = vrot.lane.b32.xlu1 %v2023_v23, %s3285_s5 }
0x14ff   :  { %v2146_v28 = vpop.permute.xlu1 %2145  ;;  %v2144_v34 = vpop.permute.xlu0 %2143 }
0x1500   :  { %v2150_v36 = vmul.f32 %v3204_v25, %v2146_v28  ;;  %v2149_v17 = vmul.f32 %v3202_v24, %v2144_v34 }
0x1502   :  { %2155 = vrot.lane.b32.xlu0 %v2150_v36, %s3285_s5  ;;  %2153 = vrot.lane.b32.xlu1 %v2149_v17, %s3285_s5 }
0x1570   :  { %v2026_v3 = vpop.permute.xlu1 %2025 }
0x1571   :  { %v3955_v41 = vadd.f32 %v2026_v3, %v2018_v7 }
0x1573   :  { %3205 = vtanh.f32 %v3955_v41 }
0x1574   :  { %v2156_v4 = vpop.permute.xlu0 %2155  ;;  %v2154_v6 = vpop.permute.xlu1 %2153 }
0x1575   :  { %v2160_v46 = vadd.f32 %v2156_v4, %v2140_v43  ;;  %v2159_v53 = vadd.f32 %v2154_v6, %v2139_v20  ;;  %v2648_v4 = vld [vmem:[#allocation2] ss:$0 sm:$0xff] }
0x1577   :  { %3207 = vtanh.f32 %v2160_v46 }
0x1578   :  { %3209 = vtanh.f32 %v2159_v53 }
0x1580   :  { %v3206_v55 = vpop.eup %3205 }
0x1581   :  { %2031 = vrot.lane.b32.xlu0 %v3206_v55, %s3284_s13 }
0x1584   :  { %v3208_v18 = vpop.eup %3207 }
0x1585   :  { %v3210_v57 = vpop.eup %3209  ;;  %2167 = vrot.lane.b32.xlu1 %v3208_v18, %s3284_s13 }
0x1586   :  { %2165 = vrot.lane.b32.xlu0 %v3210_v57, %s3284_s13 }
0x15f3   :  { %v2032_v38 = vpop.permute.xlu0 %2031 }
0x15f4   :  { %v2034_v16 = vmul.f32 %v3200_v21, %v2032_v38 }
0x15f6   :  { %v2431_v44 = vrot.slane %v2034_v16, %v3409_v27  ;;  %v2183_v29 = vrot.slane %v2034_v16, 1 }
0x15f7   :  { %v2168_v45 = vpop.permute.xlu1 %2167 }
0x15f8   :  { %v2432_v48 = vcombine.high %v2431_v44, %v2431_v44  ;;  %v2439_v49 = vrot.slane %v2431_v44, %v3409_v27  ;;  %v2172_v50 = vmul.f32 %v3204_v25, %v2168_v45  ;;  %v2166_v51 = vpop.permute.xlu0 %2165 }
0x15f9   :  { %v2171_v11 = vmul.f32 %v3202_v24, %v2166_v51 }
0x15fa   :  { %v2446_v12 = vrot.slane %v2432_v48, %v3409_v27  ;;  %v2523_v2 = vrot.slane %v2439_v49, %v3412_v30  ;;  %v2175_v9 = vrot.slane %v2172_v50, 7 }
0x15fb   :  { %2176 = vrot.lane.b32.xlu1 %v2171_v11, %s3285_s5 }
0x15fc   :  { %v2527_v10 = vrot.slane %v2446_v12, %v3412_v30  ;;  %2178 = vrot.lane.b32.xlu0 %v2175_v9, %s3285_s5  ;;  %v2554_v26 = vsel %vm2553_vm0, %v3918_v13, %v2523_v2 }
0x15fe   :  { %v2555_v8 = vsel %vm2553_vm0, %v3921_v14, %v2527_v10 }
0x15ff   :  { %2184 = vrot.lane.b32.xlu1 %v2183_v29, %s3284_s13 }
0x166d   :  { %v2177_v19 = vpop.permute.xlu1 %2176 }
0x166e   :  { %v2179_v52 = vpop.permute.xlu0 %2178 }
0x1671   :  { %v2185_v54 = vpop.permute.xlu1 %2184 }
0x1672   :  { %v2187_v63 = vsel %vm301_vm6, %v2177_v19, %v2185_v54  ;;  %v2188_v32 = vsel %vm301_vm6, %v2179_v52, %v2185_v54 }
0x1673   :  { %v2192_v56 = vrot.slane %v2187_v63, 7  ;;  %v2193_v5 = vrot.slane %v2188_v32, 7 }
0x1675   :  { %v2194_v31 = vsel %vm2191_vm10, %v2192_v56, %v2193_v5 }
0x1676   :  { %3014 = vmatmul.mubr.msk.f32.vlgmr.msra.gmra.mxu0 %vm444_vm7, %v2194_v31 }
0x1736   :  { %v2263_v58 = vpop.f32.mrf.mxu0 }
0x1737   :  { %v2264_v13 = vadd.f32 %v3884_v47, %v2263_v58 }
0x1738   :  { %v3015_v1 = vpop.f32.mrf.mxu0 }
0x1739   :  { %3211 = vtanh.f32 %v2264_v13  ;;  %v2646_v59 = vmul.f32 -1.442695, %v2264_v13 }
0x173b   :  { %3213 = vpow2.f32 %v2646_v59 }
0x1746   :  { %v3212_v14 = vpop.eup %3211 }
0x1747   :  { %2276 = vrot.lane.b32.xlu0 %v3212_v14, %s3284_s13 }
0x1748   :  { %v3214_v60 = vpop.eup %3213 }
0x1749   :  { %v2270_v62 = vadd.f32 1.0, %v3214_v60 }
0x174b   :  { %3215 = vrcp.f32 %v2270_v62 }
0x1758   :  { %v3216_v0 = vpop.eup %3215 }
0x1759   :  { %v2274_v47 = vmul.f32 %v3216_v0, %v3955_v41 }
0x17b9   :  { %v2277_v40 = vpop.permute.xlu0 %2276 }
0x17ba   :  { %v2279_v61 = vmul.f32 %v3216_v0, %v2277_v40 }
0x17bc   :  { %2281 = vrot.lane.b32.xlu1 %v2279_v61, %s3285_s5 }
0x17c0   :  { %2566 = vrot.lane.b32.xlu1 %v2647_v42, %s3286_s19 }
0x182e   :  { %v2282_v37 = vpop.permute.xlu1 %2281 }
0x182f   :  { %v2284_v33 = vadd.f32 %v2282_v37, %v2274_v47 }
0x1831   :  { %3217 = vtanh.f32 %v2284_v33 }
0x1832   :  { %v2567_v36 = vpop.permute.xlu1 %2566 }
0x183e   :  { %v3218_v35 = vpop.eup %3217 }
0x183f   :  { %2287 = vrot.lane.b32.xlu0 %v3218_v35, %s3284_s13 }
0x18b1   :  { %v2288_v21 = vpop.permute.xlu0 %2287 }
0x18b2   :  { %v2290_v22 = vmul.f32 %v3216_v0, %v2288_v21 }
0x18b4   :  { %v2454_v23 = vrot.slane %v2290_v22, %v3409_v27 }
0x18b6   :  { %v2455_v24 = vcombine.high %v2454_v23, %v2454_v23  ;;  %v2462_v25 = vrot.slane %v2454_v23, %v3409_v27 }
0x18b8   :  { %v2469_v28 = vrot.slane %v2455_v24, %v3409_v27  ;;  %v2533_v34 = vrot.slane %v2462_v25, %v3412_v30 }
0x18ba   :  { %v2537_v17 = vrot.slane %v2469_v28, %v3412_v30  ;;  %v2557_v7 = vsel %vm2556_vm4, %v2554_v26, %v2533_v34 }
0x18bb   :  { %v2569_v3 = vmul.f32 %v2567_v36, %v2557_v7 }
0x18bc   :  { %v2558_v39 = vsel %vm2556_vm4, %v2555_v8, %v2537_v17 }
0x18bd   :  { %v2570_v15 = vmul.f32 %v2567_v36, %v2558_v39  ;;  %2573 = vrot.lane.b32.xlu0 %v2569_v3, %s3285_s5 }
0x18bf   :  { %2575 = vrot.lane.b32.xlu1 %v2570_v15, %s3285_s5 }
0x192f   :  { %v2574_v41 = vpop.permute.xlu0 %2573 }
0x1930   :  { %v2579_v43 = vsel %vm301_vm6, %v2574_v41, 0.0 }
0x1931   :  { %2580 = vadd.xlane.f32.xlu0 %v2579_v43  ;;  %v2576_v20 = vpop.permute.xlu1 %2575 }
0x1932   :  { %v2582_v27 = vsel %vm301_vm6, %v2576_v20, 0.0 }
0x1933   :  { %2583 = vadd.xlane.f32.xlu1 %v2582_v27 }
0x19ba   :  { %v2581_v6 = vpop.xlane.xlu0 %2580 }
0x19bb   :  { %v2591_v46 = vadd.f32 %v2648_v4, %v2581_v6 }
0x19bc   :  { %v2584_v30 = vpop.xlane.xlu1 %2583 }
0x19bd   :  { %2593 = vst.msk [vmem:[%s4010_s10] sm:$0xff] %vm72_vm3, %v2591_v46  ;;  %v2592_v53 = vadd.f32 %v2648_v4, %v2584_v30 }
0x19bf   :  { %2594 = vst.msk [vmem:[%s4010_s10 + $0x8] sm:$0xff] %vm72_vm3, %v2592_v53 }
0x19c0   :  { %2599 = vsyncpa [#allocation4], 1 }
0x19c1   :  { %2600 = vsyncpa [#allocation6], 1 }

</bundles_post_ra>
